<compile_context>
chip_gen: v5e
topology: v5e:2x2
jax: 0.10.0
libtpu: 0.0.40
codegen_flags: <defaults>
</compile_context>

<pallas_src>
import functools

import jax
import jax.numpy as jnp
from jax.experimental import pallas as pl
from jax.experimental.pallas import tpu as pltpu


# ----------------------------------------------------------------------------
# Parameter preparation (done once, outside the jitted forward).
# ----------------------------------------------------------------------------
def _round_up(x, m):
    return ((x + m - 1) // m) * m


def _reorder_ifog(w, H):
    """Reorder a trailing gate axis from PyTorch [i, f, g, o] to [i, f, o, g]."""
    return jnp.concatenate(
        [w[..., 0:2 * H], w[..., 3 * H:4 * H], w[..., 2 * H:3 * H]], axis=-1)


def prepare_bilstm_layer_params(params_fwd, params_bwd):
    """Pre-transpose / gate-reorder / fuse one bidirectional layer's weights.

    params_* : (w_ih (4H, D_in), w_hh (4H, H), b_ih (4H,), b_hh (4H,))
    returns:
      wx_cat  : (D_in, 8H)  fused input-projection weight, cols = [fwd 4H | bwd 4H]
      b_cat   : (8H,)       fused bias (b_ih + b_hh per direction)
      whh_cat : (2H, 8H)    block-diagonal recurrent weight [[Wf,0],[0,Wb]]
    Gate order inside each 4H block is [i, f, o, g].
    """
    w_ih_f, w_hh_f, b_ih_f, b_hh_f = params_fwd
    w_ih_b, w_hh_b, b_ih_b, b_hh_b = params_bwd
    H = w_hh_f.shape[1]

    wx_f = _reorder_ifog(w_ih_f.T, H)                     # (D_in, 4H)
    wx_b = _reorder_ifog(w_ih_b.T, H)
    wx_cat = jnp.concatenate([wx_f, wx_b], axis=1)        # (D_in, 8H)

    b_cat = jnp.concatenate([_reorder_ifog(b_ih_f + b_hh_f, H),
                             _reorder_ifog(b_ih_b + b_hh_b, H)], axis=0)

    wh_f = _reorder_ifog(w_hh_f.T, H)                     # (H, 4H)
    wh_b = _reorder_ifog(w_hh_b.T, H)
    z = jnp.zeros((H, 4 * H), wh_f.dtype)
    whh_cat = jnp.concatenate(
        [jnp.concatenate([wh_f, z], axis=1),
         jnp.concatenate([z, wh_b], axis=1)], axis=0)     # (2H, 8H)
    return wx_cat, b_cat, whh_cat


# ----------------------------------------------------------------------------
# VMEM budgeting / chunk selection.
# ----------------------------------------------------------------------------
_VMEM_CHUNK_BUDGET = 36 * 1024 * 1024   # safe under v7x's 64 MiB physical VMEM


def _vmem_bytes_estimate(t_chunk, B, H):
    f32 = 4
    gx_blocks = 2 * 2 * t_chunk * B * 4 * H * f32   # fwd+bwd gate windows, 2 buffers
    out_blocks = 2 * 2 * t_chunk * B * H * f32      # fwd+bwd output windows, 2 buffers
    whh = 2 * (2 * H) * (8 * H) * f32               # resident recurrent weight
    finals = 2 * 2 * 2 * B * H * f32                # h_n + c_n blocks
    scratch = 4 * B * H * f32                       # carried h/c scratch
    return gx_blocks + out_blocks + whh + finals + scratch


def _pick_t_chunk(T, B, H, budget=_VMEM_CHUNK_BUDGET):
    per_t = _vmem_bytes_estimate(1, B, H) - _vmem_bytes_estimate(0, B, H)
    fixed = _vmem_bytes_estimate(0, B, H)
    max_tc = max(1, (budget - fixed) // per_t)
    tc = 1
    for d in range(1, T + 1):
        if T % d == 0 and d <= max_tc:
            tc = d
    return tc


# ----------------------------------------------------------------------------
# Pallas kernel: one time-chunk of a bidirectional LSTM layer.
#
#   gxf_ref : (Tc, B, 4H)  precomputed x @ Wx_f + b_f, chunk c (forward order)
#   gxb_ref : (Tc, B, 4H)  precomputed x @ Wx_b + b_b, chunk nc-1-c
#                          (time reversal is local index Tc-1-t inside)
#   whh_ref : (2H, 8H)     block-diagonal recurrent weight, VMEM-resident
#   outf_ref: (Tc, B, H)   forward hidden states for chunk c
#   outb_ref: (Tc, B, H)   backward hidden states for chunk nc-1-c
#   hN/cN   : (2, B, H)    final states (0=fwd, 1=bwd), written at last step
#   hf/cf/hb/cb scratch    (B, H) carried state across grid steps
# ----------------------------------------------------------------------------
def _bilstm_chunk_kernel(gxf_ref, gxb_ref, whh_ref,
                         outf_ref, outb_ref, hN_ref, cN_ref,
                         hf_s, cf_s, hb_s, cb_s):
    c = pl.program_id(0)
    nc = pl.num_programs(0)
    Tc, _, G4 = gxf_ref.shape
    H = G4 // 4

    @pl.when(c == 0)
    def _():
        hf_s[...] = jnp.zeros_like(hf_s)
        cf_s[...] = jnp.zeros_like(cf_s)
        hb_s[...] = jnp.zeros_like(hb_s)
        cb_s[...] = jnp.zeros_like(cb_s)

    # Recurrent weight loaded once per grid step; block index is constant so the
    # window is fetched a single time for the whole sequence.
    # TODO(synk): drive the MXU weight-stationary via pltpu.matmul_push_rhs /
    # matmul_acc_lhs to guarantee no per-step weight re-stream.
    whh = whh_ref[...]                                  # (2H, 8H)

    def cell(gates, c_prev):
        # gates: (B, 4H) pre-activations, gate order [i, f, o, g].
        sig = jax.nn.sigmoid(gates[:, 0:3 * H])         # one EUP pass over 3H
        g_g = jnp.tanh(gates[:, 3 * H:4 * H])
        i_g = sig[:, 0:H]
        f_g = sig[:, H:2 * H]
        o_g = sig[:, 2 * H:3 * H]
        c_new = f_g * c_prev + i_g * g_g
        h_new = o_g * jnp.tanh(c_new)
        return h_new, c_new

    def step(t, carry):
        h_f, c_f, h_b, c_b = carry
        tb = Tc - 1 - t
        # Single fused recurrent matmul for both directions (block-diagonal).
        h_cat = jnp.concatenate([h_f, h_b], axis=-1)    # (B, 2H)
        rec = jnp.dot(h_cat, whh, preferred_element_type=jnp.float32)  # (B, 8H)
        gates_f = gxf_ref[t] + rec[:, 0:4 * H]
        gates_b = gxb_ref[tb] + rec[:, 4 * H:8 * H]
        h_f, c_f = cell(gates_f, c_f)
        h_b, c_b = cell(gates_b, c_b)
        # Lane-dense per-direction output stores (full last dim of each output).
        outf_ref[t] = h_f
        outb_ref[tb] = h_b
        return (h_f, c_f, h_b, c_b)

    if Tc % 8 == 0:
        unroll = 8
    elif Tc % 4 == 0:
        unroll = 4
    elif Tc % 2 == 0:
        unroll = 2
    else:
        unroll = 1

    carry0 = (hf_s[...], cf_s[...], hb_s[...], cb_s[...])
    h_f, c_f, h_b, c_b = jax.lax.fori_loop(0, Tc, step, carry0, unroll=unroll)

    # Carry state to the next chunk.
    hf_s[...] = h_f
    cf_s[...] = c_f
    hb_s[...] = h_b
    cb_s[...] = c_b

    @pl.when(c == nc - 1)
    def _():
        hN_ref[0] = h_f
        hN_ref[1] = h_b
        cN_ref[0] = c_f
        cN_ref[1] = c_b


def bilstm_layer_pallas(gx, whh_cat, t_chunk):
    """One bidirectional LSTM layer, streamed in T-chunks.

    gx      : (T, B, 8H) fused pre-activations (fwd 4H | bwd 4H), bias folded in
    whh_cat : (2H, 8H)   block-diagonal recurrent weight
    returns (out_f (T,B,H), out_b (T,B,H), h_n (2,B,H), c_n (2,B,H))
    """
    T, B, G8 = gx.shape
    H = G8 // 8
    assert T % t_chunk == 0
    assert B % 8 == 0, "pad batch to a multiple of 8 sublanes before the kernel"
    assert (4 * H) % 128 == 0, "hidden size must keep 4H a multiple of 128 lanes"
    # TODO(synk): for H not a multiple of 32, pad H (zero weight/bias columns).
    nc = T // t_chunk

    est = _vmem_bytes_estimate(t_chunk, B, H)
    vmem_limit = int(min(max(2 * est + (8 << 20), 16 << 20), 48 << 20))

    # TODO(synk): on v6e/v7x at large T*B*H, store gx / outputs / whh in bf16
    # (halve VMEM+HBM traffic, 2x MXU) while keeping h/c and gate math f32;
    # kept f32 here for tight numerical parity with the f32 reference.
    grid_spec = pltpu.PrefetchScalarGridSpec(
        num_scalar_prefetch=0,
        grid=(nc,),
        in_specs=[
            # forward-direction gate half: time chunk c, lane block 0 -> [0, 4H)
            pl.BlockSpec((t_chunk, B, 4 * H), lambda c: (c, 0, 0)),
            # backward-direction gate half: time chunk nc-1-c, lane block 1 -> [4H, 8H)
            pl.BlockSpec((t_chunk, B, 4 * H), lambda c: (nc - 1 - c, 0, 1)),
            # block-diagonal recurrent weight, resident across the whole grid
            pl.BlockSpec((2 * H, 8 * H), lambda c: (0, 0)),
        ],
        out_specs=(
            pl.BlockSpec((t_chunk, B, H), lambda c: (c, 0, 0)),
            pl.BlockSpec((t_chunk, B, H), lambda c: (nc - 1 - c, 0, 0)),
            pl.BlockSpec((2, B, H), lambda c: (0, 0, 0)),
            pl.BlockSpec((2, B, H), lambda c: (0, 0, 0)),
        ),
        scratch_shapes=[pltpu.VMEM((B, H), jnp.float32) for _ in range(4)],
    )

    out_f, out_b, h_n, c_n = pl.pallas_call(
        _bilstm_chunk_kernel,
        out_shape=(
            jax.ShapeDtypeStruct((T, B, H), jnp.float32),
            jax.ShapeDtypeStruct((T, B, H), jnp.float32),
            jax.ShapeDtypeStruct((2, B, H), jnp.float32),
            jax.ShapeDtypeStruct((2, B, H), jnp.float32),
        ),
        grid_spec=grid_spec,
        compiler_params=pltpu.CompilerParams(
            dimension_semantics=("arbitrary",),
            vmem_limit_bytes=vmem_limit,
        ),
    )(gx, gx, whh_cat)
    return out_f, out_b, h_n, c_n


# ----------------------------------------------------------------------------
# Full EncoderLSTM forward (inference semantics: dropout == identity).
# ----------------------------------------------------------------------------
def encoder_lstm_forward_pallas(tokens, emb_table, layer_params, *, t_chunk=None):
    T, B = tokens.shape
    # Embedding lookup (gather kept in plain JAX).
    emb = jnp.take(emb_table, tokens, axis=0)                  # (T, B, E)
    # TODO(synk): nn.Dropout(p=0.25) on the embedding and between LSTM layers
    # is train-time stochastic; implemented as identity (eval semantics).
    B_pad = _round_up(B, 8)                                    # full sublane tile
    x = jnp.pad(emb, ((0, 0), (0, B_pad - B), (0, 0)))

    h_list, c_list = [], []
    out_f = out_b = None
    for layer, (wx_cat, b_cat, whh_cat) in enumerate(layer_params):
        H = whh_cat.shape[0] // 2
        if layer == 0:
            # One fused MXU-shaped projection (N = 8H) for both directions.
            gx = x.reshape(T * B_pad, -1) @ wx_cat + b_cat
        else:
            # Previous layer's fwd/bwd halves feed the projection directly;
            # the (T,B,2H) concat is folded into the split weight halves.
            H_in = out_f.shape[-1]
            gx = (out_f.reshape(T * B_pad, H_in) @ wx_cat[:H_in]
                  + out_b.reshape(T * B_pad, H_in) @ wx_cat[H_in:]
                  + b_cat)
        gx = gx.reshape(T, B_pad, 8 * H)
        tc = t_chunk if t_chunk is not None else _pick_t_chunk(T, B_pad, H)
        out_f, out_b, h_n, c_n = bilstm_layer_pallas(gx, whh_cat, tc)
        h_list.append(h_n)
        c_list.append(c_n)

    output = jnp.concatenate([out_f, out_b], axis=-1)[:, :B]   # (T, B, 2H)
    h_n = jnp.concatenate(h_list, axis=0)[:, :B]               # (L*2, B, H)
    c_n = jnp.concatenate(c_list, axis=0)[:, :B]
    return output, (h_n, c_n)


# ----------------------------------------------------------------------------
# Pure-JAX reference (PyTorch nn.LSTM semantics) for correctness check.
# ----------------------------------------------------------------------------
def bilstm_layer_ref(x, params_fwd, params_bwd):
    def run_dir(xd, p):
        w_ih, w_hh, b_ih, b_hh = p
        B = xd.shape[1]
        H = w_hh.shape[1]

        def step(carry, xt):
            h, c = carry
            gates = xt @ w_ih.T + h @ w_hh.T + b_ih + b_hh
            i, f, g, o = jnp.split(gates, 4, axis=-1)
            i = jax.nn.sigmoid(i)
            f = jax.nn.sigmoid(f)
            g = jnp.tanh(g)
            o = jax.nn.sigmoid(o)
            c = f * c + i * g
            h = o * jnp.tanh(c)
            return (h, c), h

        init = (jnp.zeros((B, H), jnp.float32), jnp.zeros((B, H), jnp.float32))
        (h_n, c_n), outs = jax.lax.scan(step, init, xd)
        return outs, h_n, c_n

    out_f, h_f, c_f = run_dir(x, params_fwd)
    out_b_rev, h_b, c_b = run_dir(x[::-1], params_bwd)
    out = jnp.concatenate([out_f, out_b_rev[::-1]], axis=-1)
    return out, jnp.stack([h_f, h_b], axis=0), jnp.stack([c_f, c_b], axis=0)


def encoder_lstm_forward_ref(tokens, params, num_layers):
    x = jnp.take(params["embedding"], tokens, axis=0)
    h_list, c_list = [], []
    for layer in range(num_layers):
        out, h_n, c_n = bilstm_layer_ref(x, params["lstm"][(layer, 0)],
                                         params["lstm"][(layer, 1)])
        h_list.append(h_n)
        c_list.append(c_n)
        x = out
    return x, (jnp.concatenate(h_list, axis=0), jnp.concatenate(c_list, axis=0))


# ----------------------------------------------------------------------------
# Deterministic parameter construction (mirrors nn.Embedding / nn.LSTM shapes).
# ----------------------------------------------------------------------------
def make_params(key, vocab_size, emb_dim, h_dim, num_layers):
    keys = jax.random.split(key, 1 + num_layers * 2 * 4)
    params = {"embedding": jax.random.normal(keys[0], (vocab_size, emb_dim),
                                             jnp.float32)}
    lstm = {}
    k = 1.0 / jnp.sqrt(h_dim)
    idx = 1
    for layer in range(num_layers):
        d_in = emb_dim if layer == 0 else 2 * h_dim
        for direction in range(2):
            w_ih = jax.random.uniform(keys[idx + 0], (4 * h_dim, d_in),
                                      jnp.float32, -k, k)
            w_hh = jax.random.uniform(keys[idx + 1], (4 * h_dim, h_dim),
                                      jnp.float32, -k, k)
            b_ih = jax.random.uniform(keys[idx + 2], (4 * h_dim,),
                                      jnp.float32, -k, k)
            b_hh = jax.random.uniform(keys[idx + 3], (4 * h_dim,),
                                      jnp.float32, -k, k)
            lstm[(layer, direction)] = (w_ih, w_hh, b_ih, b_hh)
            idx += 4
    params["lstm"] = lstm
    return params


if __name__ == "__main__":
    # Small shapes: seq=8, batch=4, vocab=50, embedding dim=32, h_dim_out=32,
    # num_layers=2, bidirectional=True.
    T, B, VOCAB, E, H, NUM_LAYERS = 8, 4, 50, 32, 32, 2

    key = jax.random.PRNGKey(0)
    k_tok, k_par = jax.random.split(key)
    tokens = jax.random.randint(k_tok, (T, B), 0, VOCAB, dtype=jnp.int32)
    params = make_params(k_par, VOCAB, E, H, NUM_LAYERS)

    # One-time weight prep (transpose, gate reorder, fused / block-diag weights).
    layer_params = [
        prepare_bilstm_layer_params(params["lstm"][(l, 0)], params["lstm"][(l, 1)])
        for l in range(NUM_LAYERS)
    ]

    # t_chunk=4 -> a 2-step grid per layer so the streamed path and the
    # cross-chunk h/c carry in VMEM scratch are actually exercised.
    pallas_fwd = jax.jit(functools.partial(encoder_lstm_forward_pallas, t_chunk=4))
    output, (h_n, c_n) = pallas_fwd(tokens, params["embedding"], layer_params)
    jax.block_until_ready((output, h_n, c_n))

    out_ref, (h_ref, c_ref) = encoder_lstm_forward_ref(tokens, params, NUM_LAYERS)

    assert output.shape == (T, B, 2 * H)
    assert h_n.shape == (NUM_LAYERS * 2, B, H)
    assert c_n.shape == (NUM_LAYERS * 2, B, H)
    assert jnp.allclose(output, out_ref, atol=1e-4, rtol=1e-4)
    assert jnp.allclose(h_n, h_ref, atol=1e-4, rtol=1e-4)
    assert jnp.allclose(c_n, c_ref, atol=1e-4, rtol=1e-4)

    print("KERNEL_OK")
</pallas_src>

<mosaic_0001>
module attributes {stable_mosaic.version = 11 : i64} {
  func.func @_bilstm_chunk_kernel(%arg0: i32, %arg1: memref<4x8x128xf32, #tpu.memory_space<vmem>>, %arg2: memref<4x8x128xf32, #tpu.memory_space<vmem>>, %arg3: memref<64x256xf32, #tpu.memory_space<vmem>>, %arg4: memref<4x8x32xf32, #tpu.memory_space<vmem>>, %arg5: memref<4x8x32xf32, #tpu.memory_space<vmem>>, %arg6: memref<2x8x32xf32, #tpu.memory_space<vmem>>, %arg7: memref<2x8x32xf32, #tpu.memory_space<vmem>>, %arg8: memref<8x32xf32, #tpu.memory_space<vmem>>, %arg9: memref<8x32xf32, #tpu.memory_space<vmem>>, %arg10: memref<8x32xf32, #tpu.memory_space<vmem>>, %arg11: memref<8x32xf32, #tpu.memory_space<vmem>>) attributes {dimension_semantics = [#tpu.dimension_semantics<arbitrary>], iteration_bounds = array<i64: 2>, scalar_prefetch = 0 : i64, scratch_operands = 4 : i64, tpu.core_type = #tpu.core_type<tc>, window_params = [{transform_indices = @transform_0, window_bounds = array<i64: 4, 8, 128>}, {transform_indices = @transform_1, window_bounds = array<i64: 4, 8, 128>}, {pipeline_mode = #tpu.pipeline_mode<synchronous>, transform_indices = @transform_2, window_bounds = array<i64: 64, 256>}, {transform_indices = @transform_3, window_bounds = array<i64: 4, 8, 32>}, {transform_indices = @transform_4, window_bounds = array<i64: 4, 8, 32>}, {pipeline_mode = #tpu.pipeline_mode<synchronous>, transform_indices = @transform_5, window_bounds = array<i64: 2, 8, 32>}, {pipeline_mode = #tpu.pipeline_mode<synchronous>, transform_indices = @transform_6, window_bounds = array<i64: 2, 8, 32>}]} {
    %c0_i32 = arith.constant 0 : i32
    %0 = arith.cmpi eq, %arg0, %c0_i32 : i32
    %1 = arith.extui %0 : i1 to i32
    %c0_i32_0 = arith.constant 0 : i32
    %2 = arith.cmpi ne, %1, %c0_i32_0 : i32
    scf.if %2 {
      %cst_68 = arith.constant 0.000000e+00 : f32
      %227 = vector.broadcast %cst_68 : f32 to vector<8x32xf32>
      %c0_69 = arith.constant 0 : index
      %c0_70 = arith.constant 0 : index
      %228 = vector.load %arg8[%c0_69, %c0_70] : memref<8x32xf32, #tpu.memory_space<vmem>>, vector<8x32xf32>
      tpu.vector_store %arg8[%c0_69, %c0_70], %227 {strides = array<i32>} : memref<8x32xf32, #tpu.memory_space<vmem>>, vector<8x32xf32>,
      %cst_71 = arith.constant 0.000000e+00 : f32
      %229 = vector.broadcast %cst_71 : f32 to vector<8x32xf32>
      %c0_72 = arith.constant 0 : index
      %c0_73 = arith.constant 0 : index
      %230 = vector.load %arg9[%c0_72, %c0_73] : memref<8x32xf32, #tpu.memory_space<vmem>>, vector<8x32xf32>
      tpu.vector_store %arg9[%c0_72, %c0_73], %229 {strides = array<i32>} : memref<8x32xf32, #tpu.memory_space<vmem>>, vector<8x32xf32>,
      %cst_74 = arith.constant 0.000000e+00 : f32
      %231 = vector.broadcast %cst_74 : f32 to vector<8x32xf32>
      %c0_75 = arith.constant 0 : index
      %c0_76 = arith.constant 0 : index
      %232 = vector.load %arg10[%c0_75, %c0_76] : memref<8x32xf32, #tpu.memory_space<vmem>>, vector<8x32xf32>
      tpu.vector_store %arg10[%c0_75, %c0_76], %231 {strides = array<i32>} : memref<8x32xf32, #tpu.memory_space<vmem>>, vector<8x32xf32>,
      %cst_77 = arith.constant 0.000000e+00 : f32
      %233 = vector.broadcast %cst_77 : f32 to vector<8x32xf32>
      %c0_78 = arith.constant 0 : index
      %c0_79 = arith.constant 0 : index
      %234 = vector.load %arg11[%c0_78, %c0_79] : memref<8x32xf32, #tpu.memory_space<vmem>>, vector<8x32xf32>
      tpu.vector_store %arg11[%c0_78, %c0_79], %233 {strides = array<i32>} : memref<8x32xf32, #tpu.memory_space<vmem>>, vector<8x32xf32>,
    } else {
    }
    %c0 = arith.constant 0 : index
    %c0_1 = arith.constant 0 : index
    %3 = vector.load %arg3[%c0, %c0_1] : memref<64x256xf32, #tpu.memory_space<vmem>>, vector<64x256xf32>
    %c0_2 = arith.constant 0 : index
    %c0_3 = arith.constant 0 : index
    %4 = vector.load %arg8[%c0_2, %c0_3] : memref<8x32xf32, #tpu.memory_space<vmem>>, vector<8x32xf32>
    %c0_4 = arith.constant 0 : index
    %c0_5 = arith.constant 0 : index
    %5 = vector.load %arg9[%c0_4, %c0_5] : memref<8x32xf32, #tpu.memory_space<vmem>>, vector<8x32xf32>
    %c0_6 = arith.constant 0 : index
    %c0_7 = arith.constant 0 : index
    %6 = vector.load %arg10[%c0_6, %c0_7] : memref<8x32xf32, #tpu.memory_space<vmem>>, vector<8x32xf32>
    %c0_8 = arith.constant 0 : index
    %c0_9 = arith.constant 0 : index
    %7 = vector.load %arg11[%c0_8, %c0_9] : memref<8x32xf32, #tpu.memory_space<vmem>>, vector<8x32xf32>
    %c0_i32_10 = arith.constant 0 : i32
    %c3_i32 = arith.constant 3 : i32
    %8 = arith.subi %c3_i32, %c0_i32_10 : i32
    %9 = tpu.concatenate %4, %6 in 1 : vector<8x32xf32>, vector<8x32xf32> -> vector<8x64xf32>
    %cst = arith.constant dense<0.000000e+00> : vector<8x256xf32>
    %10 = tpu.matmul %9, %3, %cst {dimension_numbers = #tpu.dot_dimension_numbers<[1], [0], [0], [1], [0, 0, 1, 1], [], []>} : vector<8x64xf32>, vector<64x256xf32>, vector<8x256xf32> -> vector<8x256xf32>
    %11 = arith.index_cast %c0_i32_10 : i32 to index
    %c0_11 = arith.constant 0 : index
    %c0_12 = arith.constant 0 : index
    %12 = vector.load %arg1[%11, %c0_11, %c0_12] : memref<4x8x128xf32, #tpu.memory_space<vmem>>, vector<1x8x128xf32>
    %13 = vector.shape_cast %12 : vector<1x8x128xf32> to vector<8x128xf32>
    %14 = vector.extract_strided_slice %10 {offsets = [0, 0], sizes = [8, 128], strides = [1, 1]} : vector<8x256xf32> to vector<8x128xf32>
    %15 = arith.addf %13, %14 : vector<8x128xf32>
    %16 = arith.index_cast %8 : i32 to index
    %c0_13 = arith.constant 0 : index
    %c0_14 = arith.constant 0 : index
    %17 = vector.load %arg2[%16, %c0_13, %c0_14] : memref<4x8x128xf32, #tpu.memory_space<vmem>>, vector<1x8x128xf32>
    %18 = vector.shape_cast %17 : vector<1x8x128xf32> to vector<8x128xf32>
    %19 = vector.extract_strided_slice %10 {offsets = [0, 128], sizes = [8, 128], strides = [1, 1]} : vector<8x256xf32> to vector<8x128xf32>
    %20 = arith.addf %18, %19 : vector<8x128xf32>
    %21 = vector.extract_strided_slice %15 {offsets = [0, 0], sizes = [8, 96], strides = [1, 1]} : vector<8x128xf32> to vector<8x96xf32>
    %22 = arith.negf %21 : vector<8x96xf32>
    %23 = math.exp %22 : vector<8x96xf32>
    %cst_15 = arith.constant 1.000000e+00 : f32
    %24 = vector.broadcast %cst_15 : f32 to vector<8x96xf32>
    %25 = arith.addf %24, %23 : vector<8x96xf32>
    %26 = arith.divf %24, %25 : vector<8x96xf32>
    %27 = vector.extract_strided_slice %15 {offsets = [0, 96], sizes = [8, 32], strides = [1, 1]} : vector<8x128xf32> to vector<8x32xf32>
    %28 = math.tanh %27 : vector<8x32xf32>
    %29 = vector.extract_strided_slice %26 {offsets = [0, 0], sizes = [8, 32], strides = [1, 1]} : vector<8x96xf32> to vector<8x32xf32>
    %30 = vector.extract_strided_slice %26 {offsets = [0, 32], sizes = [8, 32], strides = [1, 1]} : vector<8x96xf32> to vector<8x32xf32>
    %31 = vector.extract_strided_slice %26 {offsets = [0, 64], sizes = [8, 32], strides = [1, 1]} : vector<8x96xf32> to vector<8x32xf32>
    %32 = arith.mulf %30, %5 : vector<8x32xf32>
    %33 = arith.mulf %29, %28 : vector<8x32xf32>
    %34 = arith.addf %32, %33 : vector<8x32xf32>
    %35 = math.tanh %34 : vector<8x32xf32>
    %36 = arith.mulf %31, %35 : vector<8x32xf32>
    %37 = vector.extract_strided_slice %20 {offsets = [0, 0], sizes = [8, 96], strides = [1, 1]} : vector<8x128xf32> to vector<8x96xf32>
    %38 = arith.negf %37 : vector<8x96xf32>
    %39 = math.exp %38 : vector<8x96xf32>
    %cst_16 = arith.constant 1.000000e+00 : f32
    %40 = vector.broadcast %cst_16 : f32 to vector<8x96xf32>
    %41 = arith.addf %40, %39 : vector<8x96xf32>
    %42 = arith.divf %40, %41 : vector<8x96xf32>
    %43 = vector.extract_strided_slice %20 {offsets = [0, 96], sizes = [8, 32], strides = [1, 1]} : vector<8x128xf32> to vector<8x32xf32>
    %44 = math.tanh %43 : vector<8x32xf32>
    %45 = vector.extract_strided_slice %42 {offsets = [0, 0], sizes = [8, 32], strides = [1, 1]} : vector<8x96xf32> to vector<8x32xf32>
    %46 = vector.extract_strided_slice %42 {offsets = [0, 32], sizes = [8, 32], strides = [1, 1]} : vector<8x96xf32> to vector<8x32xf32>
    %47 = vector.extract_strided_slice %42 {offsets = [0, 64], sizes = [8, 32], strides = [1, 1]} : vector<8x96xf32> to vector<8x32xf32>
    %48 = arith.mulf %46, %7 : vector<8x32xf32>
    %49 = arith.mulf %45, %44 : vector<8x32xf32>
    %50 = arith.addf %48, %49 : vector<8x32xf32>
    %51 = math.tanh %50 : vector<8x32xf32>
    %52 = arith.mulf %47, %51 : vector<8x32xf32>
    %53 = arith.index_cast %c0_i32_10 : i32 to index
    %c0_17 = arith.constant 0 : index
    %c0_18 = arith.constant 0 : index
    %54 = vector.load %arg4[%53, %c0_17, %c0_18] : memref<4x8x32xf32, #tpu.memory_space<vmem>>, vector<1x8x32xf32>
    %55 = vector.shape_cast %54 : vector<1x8x32xf32> to vector<8x32xf32>
    %56 = vector.shape_cast %36 : vector<8x32xf32> to vector<1x8x32xf32>
    tpu.vector_store %arg4[%53, %c0_17, %c0_18], %56 {strides = array<i32>} : memref<4x8x32xf32, #tpu.memory_space<vmem>>, vector<1x8x32xf32>,
    %57 = arith.index_cast %8 : i32 to index
    %c0_19 = arith.constant 0 : index
    %c0_20 = arith.constant 0 : index
    %58 = vector.load %arg5[%57, %c0_19, %c0_20] : memref<4x8x32xf32, #tpu.memory_space<vmem>>, vector<1x8x32xf32>
    %59 = vector.shape_cast %58 : vector<1x8x32xf32> to vector<8x32xf32>
    %60 = vector.shape_cast %52 : vector<8x32xf32> to vector<1x8x32xf32>
    tpu.vector_store %arg5[%57, %c0_19, %c0_20], %60 {strides = array<i32>} : memref<4x8x32xf32, #tpu.memory_space<vmem>>, vector<1x8x32xf32>,
    %c1_i32 = arith.constant 1 : i32
    %c3_i32_21 = arith.constant 3 : i32
    %61 = arith.subi %c3_i32_21, %c1_i32 : i32
    %62 = tpu.concatenate %36, %52 in 1 : vector<8x32xf32>, vector<8x32xf32> -> vector<8x64xf32>
    %cst_22 = arith.constant dense<0.000000e+00> : vector<8x256xf32>
    %63 = tpu.matmul %62, %3, %cst_22 {dimension_numbers = #tpu.dot_dimension_numbers<[1], [0], [0], [1], [0, 0, 1, 1], [], []>} : vector<8x64xf32>, vector<64x256xf32>, vector<8x256xf32> -> vector<8x256xf32>
    %64 = arith.index_cast %c1_i32 : i32 to index
    %c0_23 = arith.constant 0 : index
    %c0_24 = arith.constant 0 : index
    %65 = vector.load %arg1[%64, %c0_23, %c0_24] : memref<4x8x128xf32, #tpu.memory_space<vmem>>, vector<1x8x128xf32>
    %66 = vector.shape_cast %65 : vector<1x8x128xf32> to vector<8x128xf32>
    %67 = vector.extract_strided_slice %63 {offsets = [0, 0], sizes = [8, 128], strides = [1, 1]} : vector<8x256xf32> to vector<8x128xf32>
    %68 = arith.addf %66, %67 : vector<8x128xf32>
    %69 = arith.index_cast %61 : i32 to index
    %c0_25 = arith.constant 0 : index
    %c0_26 = arith.constant 0 : index
    %70 = vector.load %arg2[%69, %c0_25, %c0_26] : memref<4x8x128xf32, #tpu.memory_space<vmem>>, vector<1x8x128xf32>
    %71 = vector.shape_cast %70 : vector<1x8x128xf32> to vector<8x128xf32>
    %72 = vector.extract_strided_slice %63 {offsets = [0, 128], sizes = [8, 128], strides = [1, 1]} : vector<8x256xf32> to vector<8x128xf32>
    %73 = arith.addf %71, %72 : vector<8x128xf32>
    %74 = vector.extract_strided_slice %68 {offsets = [0, 0], sizes = [8, 96], strides = [1, 1]} : vector<8x128xf32> to vector<8x96xf32>
    %75 = arith.negf %74 : vector<8x96xf32>
    %76 = math.exp %75 : vector<8x96xf32>
    %cst_27 = arith.constant 1.000000e+00 : f32
    %77 = vector.broadcast %cst_27 : f32 to vector<8x96xf32>
    %78 = arith.addf %77, %76 : vector<8x96xf32>
    %79 = arith.divf %77, %78 : vector<8x96xf32>
    %80 = vector.extract_strided_slice %68 {offsets = [0, 96], sizes = [8, 32], strides = [1, 1]} : vector<8x128xf32> to vector<8x32xf32>
    %81 = math.tanh %80 : vector<8x32xf32>
    %82 = vector.extract_strided_slice %79 {offsets = [0, 0], sizes = [8, 32], strides = [1, 1]} : vector<8x96xf32> to vector<8x32xf32>
    %83 = vector.extract_strided_slice %79 {offsets = [0, 32], sizes = [8, 32], strides = [1, 1]} : vector<8x96xf32> to vector<8x32xf32>
    %84 = vector.extract_strided_slice %79 {offsets = [0, 64], sizes = [8, 32], strides = [1, 1]} : vector<8x96xf32> to vector<8x32xf32>
    %85 = arith.mulf %83, %34 : vector<8x32xf32>
    %86 = arith.mulf %82, %81 : vector<8x32xf32>
    %87 = arith.addf %85, %86 : vector<8x32xf32>
    %88 = math.tanh %87 : vector<8x32xf32>
    %89 = arith.mulf %84, %88 : vector<8x32xf32>
    %90 = vector.extract_strided_slice %73 {offsets = [0, 0], sizes = [8, 96], strides = [1, 1]} : vector<8x128xf32> to vector<8x96xf32>
    %91 = arith.negf %90 : vector<8x96xf32>
    %92 = math.exp %91 : vector<8x96xf32>
    %cst_28 = arith.constant 1.000000e+00 : f32
    %93 = vector.broadcast %cst_28 : f32 to vector<8x96xf32>
    %94 = arith.addf %93, %92 : vector<8x96xf32>
    %95 = arith.divf %93, %94 : vector<8x96xf32>
    %96 = vector.extract_strided_slice %73 {offsets = [0, 96], sizes = [8, 32], strides = [1, 1]} : vector<8x128xf32> to vector<8x32xf32>
    %97 = math.tanh %96 : vector<8x32xf32>
    %98 = vector.extract_strided_slice %95 {offsets = [0, 0], sizes = [8, 32], strides = [1, 1]} : vector<8x96xf32> to vector<8x32xf32>
    %99 = vector.extract_strided_slice %95 {offsets = [0, 32], sizes = [8, 32], strides = [1, 1]} : vector<8x96xf32> to vector<8x32xf32>
    %100 = vector.extract_strided_slice %95 {offsets = [0, 64], sizes = [8, 32], strides = [1, 1]} : vector<8x96xf32> to vector<8x32xf32>
    %101 = arith.mulf %99, %50 : vector<8x32xf32>
    %102 = arith.mulf %98, %97 : vector<8x32xf32>
    %103 = arith.addf %101, %102 : vector<8x32xf32>
    %104 = math.tanh %103 : vector<8x32xf32>
    %105 = arith.mulf %100, %104 : vector<8x32xf32>
    %106 = arith.index_cast %c1_i32 : i32 to index
    %c0_29 = arith.constant 0 : index
    %c0_30 = arith.constant 0 : index
    %107 = vector.load %arg4[%106, %c0_29, %c0_30] : memref<4x8x32xf32, #tpu.memory_space<vmem>>, vector<1x8x32xf32>
    %108 = vector.shape_cast %107 : vector<1x8x32xf32> to vector<8x32xf32>
    %109 = vector.shape_cast %89 : vector<8x32xf32> to vector<1x8x32xf32>
    tpu.vector_store %arg4[%106, %c0_29, %c0_30], %109 {strides = array<i32>} : memref<4x8x32xf32, #tpu.memory_space<vmem>>, vector<1x8x32xf32>,
    %110 = arith.index_cast %61 : i32 to index
    %c0_31 = arith.constant 0 : index
    %c0_32 = arith.constant 0 : index
    %111 = vector.load %arg5[%110, %c0_31, %c0_32] : memref<4x8x32xf32, #tpu.memory_space<vmem>>, vector<1x8x32xf32>
    %112 = vector.shape_cast %111 : vector<1x8x32xf32> to vector<8x32xf32>
    %113 = vector.shape_cast %105 : vector<8x32xf32> to vector<1x8x32xf32>
    tpu.vector_store %arg5[%110, %c0_31, %c0_32], %113 {strides = array<i32>} : memref<4x8x32xf32, #tpu.memory_space<vmem>>, vector<1x8x32xf32>,
    %c2_i32 = arith.constant 2 : i32
    %c3_i32_33 = arith.constant 3 : i32
    %114 = arith.subi %c3_i32_33, %c2_i32 : i32
    %115 = tpu.concatenate %89, %105 in 1 : vector<8x32xf32>, vector<8x32xf32> -> vector<8x64xf32>
    %cst_34 = arith.constant dense<0.000000e+00> : vector<8x256xf32>
    %116 = tpu.matmul %115, %3, %cst_34 {dimension_numbers = #tpu.dot_dimension_numbers<[1], [0], [0], [1], [0, 0, 1, 1], [], []>} : vector<8x64xf32>, vector<64x256xf32>, vector<8x256xf32> -> vector<8x256xf32>
    %117 = arith.index_cast %c2_i32 : i32 to index
    %c0_35 = arith.constant 0 : index
    %c0_36 = arith.constant 0 : index
    %118 = vector.load %arg1[%117, %c0_35, %c0_36] : memref<4x8x128xf32, #tpu.memory_space<vmem>>, vector<1x8x128xf32>
    %119 = vector.shape_cast %118 : vector<1x8x128xf32> to vector<8x128xf32>
    %120 = vector.extract_strided_slice %116 {offsets = [0, 0], sizes = [8, 128], strides = [1, 1]} : vector<8x256xf32> to vector<8x128xf32>
    %121 = arith.addf %119, %120 : vector<8x128xf32>
    %122 = arith.index_cast %114 : i32 to index
    %c0_37 = arith.constant 0 : index
    %c0_38 = arith.constant 0 : index
    %123 = vector.load %arg2[%122, %c0_37, %c0_38] : memref<4x8x128xf32, #tpu.memory_space<vmem>>, vector<1x8x128xf32>
    %124 = vector.shape_cast %123 : vector<1x8x128xf32> to vector<8x128xf32>
    %125 = vector.extract_strided_slice %116 {offsets = [0, 128], sizes = [8, 128], strides = [1, 1]} : vector<8x256xf32> to vector<8x128xf32>
    %126 = arith.addf %124, %125 : vector<8x128xf32>
    %127 = vector.extract_strided_slice %121 {offsets = [0, 0], sizes = [8, 96], strides = [1, 1]} : vector<8x128xf32> to vector<8x96xf32>
    %128 = arith.negf %127 : vector<8x96xf32>
    %129 = math.exp %128 : vector<8x96xf32>
    %cst_39 = arith.constant 1.000000e+00 : f32
    %130 = vector.broadcast %cst_39 : f32 to vector<8x96xf32>
    %131 = arith.addf %130, %129 : vector<8x96xf32>
    %132 = arith.divf %130, %131 : vector<8x96xf32>
    %133 = vector.extract_strided_slice %121 {offsets = [0, 96], sizes = [8, 32], strides = [1, 1]} : vector<8x128xf32> to vector<8x32xf32>
    %134 = math.tanh %133 : vector<8x32xf32>
    %135 = vector.extract_strided_slice %132 {offsets = [0, 0], sizes = [8, 32], strides = [1, 1]} : vector<8x96xf32> to vector<8x32xf32>
    %136 = vector.extract_strided_slice %132 {offsets = [0, 32], sizes = [8, 32], strides = [1, 1]} : vector<8x96xf32> to vector<8x32xf32>
    %137 = vector.extract_strided_slice %132 {offsets = [0, 64], sizes = [8, 32], strides = [1, 1]} : vector<8x96xf32> to vector<8x32xf32>
    %138 = arith.mulf %136, %87 : vector<8x32xf32>
    %139 = arith.mulf %135, %134 : vector<8x32xf32>
    %140 = arith.addf %138, %139 : vector<8x32xf32>
    %141 = math.tanh %140 : vector<8x32xf32>
    %142 = arith.mulf %137, %141 : vector<8x32xf32>
    %143 = vector.extract_strided_slice %126 {offsets = [0, 0], sizes = [8, 96], strides = [1, 1]} : vector<8x128xf32> to vector<8x96xf32>
    %144 = arith.negf %143 : vector<8x96xf32>
    %145 = math.exp %144 : vector<8x96xf32>
    %cst_40 = arith.constant 1.000000e+00 : f32
    %146 = vector.broadcast %cst_40 : f32 to vector<8x96xf32>
    %147 = arith.addf %146, %145 : vector<8x96xf32>
    %148 = arith.divf %146, %147 : vector<8x96xf32>
    %149 = vector.extract_strided_slice %126 {offsets = [0, 96], sizes = [8, 32], strides = [1, 1]} : vector<8x128xf32> to vector<8x32xf32>
    %150 = math.tanh %149 : vector<8x32xf32>
    %151 = vector.extract_strided_slice %148 {offsets = [0, 0], sizes = [8, 32], strides = [1, 1]} : vector<8x96xf32> to vector<8x32xf32>
    %152 = vector.extract_strided_slice %148 {offsets = [0, 32], sizes = [8, 32], strides = [1, 1]} : vector<8x96xf32> to vector<8x32xf32>
    %153 = vector.extract_strided_slice %148 {offsets = [0, 64], sizes = [8, 32], strides = [1, 1]} : vector<8x96xf32> to vector<8x32xf32>
    %154 = arith.mulf %152, %103 : vector<8x32xf32>
    %155 = arith.mulf %151, %150 : vector<8x32xf32>
    %156 = arith.addf %154, %155 : vector<8x32xf32>
    %157 = math.tanh %156 : vector<8x32xf32>
    %158 = arith.mulf %153, %157 : vector<8x32xf32>
    %159 = arith.index_cast %c2_i32 : i32 to index
    %c0_41 = arith.constant 0 : index
    %c0_42 = arith.constant 0 : index
    %160 = vector.load %arg4[%159, %c0_41, %c0_42] : memref<4x8x32xf32, #tpu.memory_space<vmem>>, vector<1x8x32xf32>
    %161 = vector.shape_cast %160 : vector<1x8x32xf32> to vector<8x32xf32>
    %162 = vector.shape_cast %142 : vector<8x32xf32> to vector<1x8x32xf32>
    tpu.vector_store %arg4[%159, %c0_41, %c0_42], %162 {strides = array<i32>} : memref<4x8x32xf32, #tpu.memory_space<vmem>>, vector<1x8x32xf32>,
    %163 = arith.index_cast %114 : i32 to index
    %c0_43 = arith.constant 0 : index
    %c0_44 = arith.constant 0 : index
    %164 = vector.load %arg5[%163, %c0_43, %c0_44] : memref<4x8x32xf32, #tpu.memory_space<vmem>>, vector<1x8x32xf32>
    %165 = vector.shape_cast %164 : vector<1x8x32xf32> to vector<8x32xf32>
    %166 = vector.shape_cast %158 : vector<8x32xf32> to vector<1x8x32xf32>
    tpu.vector_store %arg5[%163, %c0_43, %c0_44], %166 {strides = array<i32>} : memref<4x8x32xf32, #tpu.memory_space<vmem>>, vector<1x8x32xf32>,
    %c3_i32_45 = arith.constant 3 : i32
    %c3_i32_46 = arith.constant 3 : i32
    %167 = arith.subi %c3_i32_46, %c3_i32_45 : i32
    %168 = tpu.concatenate %142, %158 in 1 : vector<8x32xf32>, vector<8x32xf32> -> vector<8x64xf32>
    %cst_47 = arith.constant dense<0.000000e+00> : vector<8x256xf32>
    %169 = tpu.matmul %168, %3, %cst_47 {dimension_numbers = #tpu.dot_dimension_numbers<[1], [0], [0], [1], [0, 0, 1, 1], [], []>} : vector<8x64xf32>, vector<64x256xf32>, vector<8x256xf32> -> vector<8x256xf32>
    %170 = arith.index_cast %c3_i32_45 : i32 to index
    %c0_48 = arith.constant 0 : index
    %c0_49 = arith.constant 0 : index
    %171 = vector.load %arg1[%170, %c0_48, %c0_49] : memref<4x8x128xf32, #tpu.memory_space<vmem>>, vector<1x8x128xf32>
    %172 = vector.shape_cast %171 : vector<1x8x128xf32> to vector<8x128xf32>
    %173 = vector.extract_strided_slice %169 {offsets = [0, 0], sizes = [8, 128], strides = [1, 1]} : vector<8x256xf32> to vector<8x128xf32>
    %174 = arith.addf %172, %173 : vector<8x128xf32>
    %175 = arith.index_cast %167 : i32 to index
    %c0_50 = arith.constant 0 : index
    %c0_51 = arith.constant 0 : index
    %176 = vector.load %arg2[%175, %c0_50, %c0_51] : memref<4x8x128xf32, #tpu.memory_space<vmem>>, vector<1x8x128xf32>
    %177 = vector.shape_cast %176 : vector<1x8x128xf32> to vector<8x128xf32>
    %178 = vector.extract_strided_slice %169 {offsets = [0, 128], sizes = [8, 128], strides = [1, 1]} : vector<8x256xf32> to vector<8x128xf32>
    %179 = arith.addf %177, %178 : vector<8x128xf32>
    %180 = vector.extract_strided_slice %174 {offsets = [0, 0], sizes = [8, 96], strides = [1, 1]} : vector<8x128xf32> to vector<8x96xf32>
    %181 = arith.negf %180 : vector<8x96xf32>
    %182 = math.exp %181 : vector<8x96xf32>
    %cst_52 = arith.constant 1.000000e+00 : f32
    %183 = vector.broadcast %cst_52 : f32 to vector<8x96xf32>
    %184 = arith.addf %183, %182 : vector<8x96xf32>
    %185 = arith.divf %183, %184 : vector<8x96xf32>
    %186 = vector.extract_strided_slice %174 {offsets = [0, 96], sizes = [8, 32], strides = [1, 1]} : vector<8x128xf32> to vector<8x32xf32>
    %187 = math.tanh %186 : vector<8x32xf32>
    %188 = vector.extract_strided_slice %185 {offsets = [0, 0], sizes = [8, 32], strides = [1, 1]} : vector<8x96xf32> to vector<8x32xf32>
    %189 = vector.extract_strided_slice %185 {offsets = [0, 32], sizes = [8, 32], strides = [1, 1]} : vector<8x96xf32> to vector<8x32xf32>
    %190 = vector.extract_strided_slice %185 {offsets = [0, 64], sizes = [8, 32], strides = [1, 1]} : vector<8x96xf32> to vector<8x32xf32>
    %191 = arith.mulf %189, %140 : vector<8x32xf32>
    %192 = arith.mulf %188, %187 : vector<8x32xf32>
    %193 = arith.addf %191, %192 : vector<8x32xf32>
    %194 = math.tanh %193 : vector<8x32xf32>
    %195 = arith.mulf %190, %194 : vector<8x32xf32>
    %196 = vector.extract_strided_slice %179 {offsets = [0, 0], sizes = [8, 96], strides = [1, 1]} : vector<8x128xf32> to vector<8x96xf32>
    %197 = arith.negf %196 : vector<8x96xf32>
    %198 = math.exp %197 : vector<8x96xf32>
    %cst_53 = arith.constant 1.000000e+00 : f32
    %199 = vector.broadcast %cst_53 : f32 to vector<8x96xf32>
    %200 = arith.addf %199, %198 : vector<8x96xf32>
    %201 = arith.divf %199, %200 : vector<8x96xf32>
    %202 = vector.extract_strided_slice %179 {offsets = [0, 96], sizes = [8, 32], strides = [1, 1]} : vector<8x128xf32> to vector<8x32xf32>
    %203 = math.tanh %202 : vector<8x32xf32>
    %204 = vector.extract_strided_slice %201 {offsets = [0, 0], sizes = [8, 32], strides = [1, 1]} : vector<8x96xf32> to vector<8x32xf32>
    %205 = vector.extract_strided_slice %201 {offsets = [0, 32], sizes = [8, 32], strides = [1, 1]} : vector<8x96xf32> to vector<8x32xf32>
    %206 = vector.extract_strided_slice %201 {offsets = [0, 64], sizes = [8, 32], strides = [1, 1]} : vector<8x96xf32> to vector<8x32xf32>
    %207 = arith.mulf %205, %156 : vector<8x32xf32>
    %208 = arith.mulf %204, %203 : vector<8x32xf32>
    %209 = arith.addf %207, %208 : vector<8x32xf32>
    %210 = math.tanh %209 : vector<8x32xf32>
    %211 = arith.mulf %206, %210 : vector<8x32xf32>
    %212 = arith.index_cast %c3_i32_45 : i32 to index
    %c0_54 = arith.constant 0 : index
    %c0_55 = arith.constant 0 : index
    %213 = vector.load %arg4[%212, %c0_54, %c0_55] : memref<4x8x32xf32, #tpu.memory_space<vmem>>, vector<1x8x32xf32>
    %214 = vector.shape_cast %213 : vector<1x8x32xf32> to vector<8x32xf32>
    %215 = vector.shape_cast %195 : vector<8x32xf32> to vector<1x8x32xf32>
    tpu.vector_store %arg4[%212, %c0_54, %c0_55], %215 {strides = array<i32>} : memref<4x8x32xf32, #tpu.memory_space<vmem>>, vector<1x8x32xf32>,
    %216 = arith.index_cast %167 : i32 to index
    %c0_56 = arith.constant 0 : index
    %c0_57 = arith.constant 0 : index
    %217 = vector.load %arg5[%216, %c0_56, %c0_57] : memref<4x8x32xf32, #tpu.memory_space<vmem>>, vector<1x8x32xf32>
    %218 = vector.shape_cast %217 : vector<1x8x32xf32> to vector<8x32xf32>
    %219 = vector.shape_cast %211 : vector<8x32xf32> to vector<1x8x32xf32>
    tpu.vector_store %arg5[%216, %c0_56, %c0_57], %219 {strides = array<i32>} : memref<4x8x32xf32, #tpu.memory_space<vmem>>, vector<1x8x32xf32>,
    %c4_i32 = arith.constant 4 : i32
    %c0_58 = arith.constant 0 : index
    %c0_59 = arith.constant 0 : index
    %220 = vector.load %arg8[%c0_58, %c0_59] : memref<8x32xf32, #tpu.memory_space<vmem>>, vector<8x32xf32>
    tpu.vector_store %arg8[%c0_58, %c0_59], %195 {strides = array<i32>} : memref<8x32xf32, #tpu.memory_space<vmem>>, vector<8x32xf32>,
    %c0_60 = arith.constant 0 : index
    %c0_61 = arith.constant 0 : index
    %221 = vector.load %arg9[%c0_60, %c0_61] : memref<8x32xf32, #tpu.memory_space<vmem>>, vector<8x32xf32>
    tpu.vector_store %arg9[%c0_60, %c0_61], %193 {strides = array<i32>} : memref<8x32xf32, #tpu.memory_space<vmem>>, vector<8x32xf32>,
    %c0_62 = arith.constant 0 : index
    %c0_63 = arith.constant 0 : index
    %222 = vector.load %arg10[%c0_62, %c0_63] : memref<8x32xf32, #tpu.memory_space<vmem>>, vector<8x32xf32>
    tpu.vector_store %arg10[%c0_62, %c0_63], %211 {strides = array<i32>} : memref<8x32xf32, #tpu.memory_space<vmem>>, vector<8x32xf32>,
    %c0_64 = arith.constant 0 : index
    %c0_65 = arith.constant 0 : index
    %223 = vector.load %arg11[%c0_64, %c0_65] : memref<8x32xf32, #tpu.memory_space<vmem>>, vector<8x32xf32>
    tpu.vector_store %arg11[%c0_64, %c0_65], %209 {strides = array<i32>} : memref<8x32xf32, #tpu.memory_space<vmem>>, vector<8x32xf32>,
    %c1_i32_66 = arith.constant 1 : i32
    %224 = arith.cmpi eq, %arg0, %c1_i32_66 : i32
    %225 = arith.extui %224 : i1 to i32
    %c0_i32_67 = arith.constant 0 : i32
    %226 = arith.cmpi ne, %225, %c0_i32_67 : i32
    scf.if %226 {
      %c0_68 = arith.constant 0 : index
      %c0_69 = arith.constant 0 : index
      %c0_70 = arith.constant 0 : index
      %227 = vector.load %arg6[%c0_68, %c0_69, %c0_70] : memref<2x8x32xf32, #tpu.memory_space<vmem>>, vector<1x8x32xf32>
      %228 = vector.shape_cast %227 : vector<1x8x32xf32> to vector<8x32xf32>
      %229 = vector.shape_cast %195 : vector<8x32xf32> to vector<1x8x32xf32>
      tpu.vector_store %arg6[%c0_68, %c0_69, %c0_70], %229 {strides = array<i32>} : memref<2x8x32xf32, #tpu.memory_space<vmem>>, vector<1x8x32xf32>,
      %c1 = arith.constant 1 : index
      %c0_71 = arith.constant 0 : index
      %c0_72 = arith.constant 0 : index
      %230 = vector.load %arg6[%c1, %c0_71, %c0_72] : memref<2x8x32xf32, #tpu.memory_space<vmem>>, vector<1x8x32xf32>
      %231 = vector.shape_cast %230 : vector<1x8x32xf32> to vector<8x32xf32>
      %232 = vector.shape_cast %211 : vector<8x32xf32> to vector<1x8x32xf32>
      tpu.vector_store %arg6[%c1, %c0_71, %c0_72], %232 {strides = array<i32>} : memref<2x8x32xf32, #tpu.memory_space<vmem>>, vector<1x8x32xf32>,
      %c0_73 = arith.constant 0 : index
      %c0_74 = arith.constant 0 : index
      %c0_75 = arith.constant 0 : index
      %233 = vector.load %arg7[%c0_73, %c0_74, %c0_75] : memref<2x8x32xf32, #tpu.memory_space<vmem>>, vector<1x8x32xf32>
      %234 = vector.shape_cast %233 : vector<1x8x32xf32> to vector<8x32xf32>
      %235 = vector.shape_cast %193 : vector<8x32xf32> to vector<1x8x32xf32>
      tpu.vector_store %arg7[%c0_73, %c0_74, %c0_75], %235 {strides = array<i32>} : memref<2x8x32xf32, #tpu.memory_space<vmem>>, vector<1x8x32xf32>,
      %c1_76 = arith.constant 1 : index
      %c0_77 = arith.constant 0 : index
      %c0_78 = arith.constant 0 : index
      %236 = vector.load %arg7[%c1_76, %c0_77, %c0_78] : memref<2x8x32xf32, #tpu.memory_space<vmem>>, vector<1x8x32xf32>
      %237 = vector.shape_cast %236 : vector<1x8x32xf32> to vector<8x32xf32>
      %238 = vector.shape_cast %209 : vector<8x32xf32> to vector<1x8x32xf32>
      tpu.vector_store %arg7[%c1_76, %c0_77, %c0_78], %238 {strides = array<i32>} : memref<2x8x32xf32, #tpu.memory_space<vmem>>, vector<1x8x32xf32>,
    } else {
    }
    return
  }
  func.func @transform_0(%arg0: i32) -> (i32, i32, i32) {
    %c0_i32 = arith.constant 0 : i32
    %c0_i32_0 = arith.constant 0 : i32
    %c0_i32_1 = arith.constant 0 : i32
    return %arg0, %c0_i32, %c0_i32_0 : i32, i32, i32
  }
  func.func @transform_1(%arg0: i32) -> (i32, i32, i32) {
    %c1_i32 = arith.constant 1 : i32
    %0 = arith.subi %c1_i32, %arg0 : i32
    %c0_i32 = arith.constant 0 : i32
    %c1_i32_0 = arith.constant 1 : i32
    %c0_i32_1 = arith.constant 0 : i32
    return %0, %c0_i32, %c1_i32_0 : i32, i32, i32
  }
  func.func @transform_2(%arg0: i32) -> (i32, i32) {
    %c0_i32 = arith.constant 0 : i32
    %c0_i32_0 = arith.constant 0 : i32
    %c0_i32_1 = arith.constant 0 : i32
    return %c0_i32, %c0_i32_0 : i32, i32
  }
  func.func @transform_3(%arg0: i32) -> (i32, i32, i32) {
    %c0_i32 = arith.constant 0 : i32
    %c0_i32_0 = arith.constant 0 : i32
    %c0_i32_1 = arith.constant 0 : i32
    return %arg0, %c0_i32, %c0_i32_0 : i32, i32, i32
  }
  func.func @transform_4(%arg0: i32) -> (i32, i32, i32) {
    %c1_i32 = arith.constant 1 : i32
    %0 = arith.subi %c1_i32, %arg0 : i32
    %c0_i32 = arith.constant 0 : i32
    %c0_i32_0 = arith.constant 0 : i32
    %c0_i32_1 = arith.constant 0 : i32
    return %0, %c0_i32, %c0_i32_0 : i32, i32, i32
  }
  func.func @transform_5(%arg0: i32) -> (i32, i32, i32) {
    %c0_i32 = arith.constant 0 : i32
    %c0_i32_0 = arith.constant 0 : i32
    %c0_i32_1 = arith.constant 0 : i32
    %c0_i32_2 = arith.constant 0 : i32
    return %c0_i32, %c0_i32_0, %c0_i32_1 : i32, i32, i32
  }
  func.func @transform_6(%arg0: i32) -> (i32, i32, i32) {
    %c0_i32 = arith.constant 0 : i32
    %c0_i32_0 = arith.constant 0 : i32
    %c0_i32_1 = arith.constant 0 : i32
    %c0_i32_2 = arith.constant 0 : i32
    return %c0_i32, %c0_i32_0, %c0_i32_1 : i32, i32, i32
  }
}

</mosaic_0001>

<bundles_post_ra>
// kernel: encoder_lstm_forward_pallas.2
= control target key start
LH: loop header
LB: loop body
LE: loop exit
PB: predicated region body
PF: predicated region fallthrough
CT: control target
= control target key end

     0   :  { %s1382_s21 = smov 0   ;;  %s1384_s22 = smov 0   ;;  %s1664_s0 = inlined_call_operand.vmem [shape: f32[8,8,256], index: 0, kind: input, shape index: {}, may-alias: {0,1}]   ;;  %s1665_s1 = inlined_call_operand.vmem [shape: f32[8,8,256], index: 1, kind: input, shape index: {}, may-alias: {0,1}]   ;;  %s1666_s2 = inlined_call_operand.vmem [shape: f32[64,256], index: 2, kind: input, shape index: {}]   ;;  %s1667_s3 = inlined_call_operand.vmem [shape: f32[8,8,32], index: 3, kind: output, shape index: {0}]   ;;  %s1668_s4 = inlined_call_operand.vmem [shape: f32[8,8,32], index: 4, kind: output, shape index: {1}]   ;;  %s1669_s5 = inlined_call_operand.vmem [shape: f32[2,8,32], index: 5, kind: output, shape index: {2}]   ;;  %s1670_s6 = inlined_call_operand.vmem [shape: f32[2,8,32], index: 6, kind: output, shape index: {3}]  }
   0x1   :  { %s1386_s23 = smov 0   ;;  %s1388_s24 = smov 0  }
   0x2   :  { %s1390_s25 = smov 0  }
   0x3 LB: > { %s1408_s26 = sadd.s32 4294967295, %s1341_s25   ;;  %s1411_s27 = sadd.s32 1, %s1341_s25   ;;  %s1341_s25 = sphi %s1390_s25, %s1676_s25   ;;  %s1337_s24 = sphi %s1388_s24, %s1675_s24   ;;  %s1333_s23 = sphi %s1386_s23, %s1674_s23   ;;  %s1329_s22 = sphi %s1384_s22, %s1673_s22   ;;  %s1325_s21 = sphi %s1382_s21, %s1672_s21  }
   0x4   : > { %s21_s28 = ssub.s32 %s1341_s25, %s1411_s27  ;;  %s24_s29 = sadd.s32 1, %s1337_s24 }
   0x5   : > { %p22_p0 = scmp.eq.s32.totalorder %s21_s28, 0  ;;  %p31_p1 = scmp.ne.s32.totalorder %s1337_s24, %s1333_s23 }
   0x6   : > { %p32_p2 = scmp.eq.s32.totalorder %s1341_s25, 0  ;;  %s47_s30 = ssub.s32 1, %s1341_s25 }
   0x7   : > { %s1421_s7 = scalar_select %p22_p0, %s1337_s24, %s24_s29  }
   0x8   : > { %p33_p3 = por %p32_p2, %p31_p1  ;;  %s48_s8 = ssub.s32 1, %s1411_s27 }
   0x9   : > { %s49_s9 = ssub.s32 %s47_s30, %s48_s8  ;;  %s52_s10 = sadd.s32 1, %s1329_s22 }
   0xa   : > { %p50_p4 = scmp.eq.s32.totalorder %s49_s9, 0  ;;  %p59_p5 = scmp.ne.s32.totalorder %s1329_s22, %s1325_s21 }
   0xb   : > { %p1139_p7 = scmp.ge.s32.totalorder %s1341_s25, 2 }
   0xc   : > { %s1428_s11 = scalar_select %p50_p4, %s1329_s22, %s52_s10  }
   0xd   : > { %p1430_p6 = por %p59_p5, %p32_p2  ;;  %205 = sbr.rel (%p1139_p7) target bundleno = 34 (0x22), region = 20 }
  0x12   : > { %208 = sbr.rel (!%p33_p3) target bundleno = 26 (0x1a), region = 24  ;;  %s210_s13 = sand.u32 (%p33_p3), 1, %s1337_s24  }
  0x13   : > { %s1193_s14 = sshll.u32 (%p33_p3), %s1341_s25, 6  ;;  %s1140_s15 = sshll.u32 (%p33_p3), %s210_s13, 5 }
  0x14   : > { %s216_s18 = scalar_lea.vmem (%p33_p3), %s1664_s0, %s1193_s14  ;;  %s212_s19 = scalar_lea.vmem (%p33_p3), [#allocation6], %s1140_s15 }
  0x15   : > { %v251_v0 = vld [vmem:[%s216_s18] sm:$0xff] (%p33_p3)  ;;  %v253_v1 = vld [vmem:[%s216_s18 + $0x10] sm:$0xff] (%p33_p3) }
  0x16   : > { %v255_v2 = vld [vmem:[%s216_s18 + $0x20] sm:$0xff] (%p33_p3)  ;;  %252 = vst [vmem:[%s212_s19] sm:$0xff] (%p33_p3), %v251_v0  ;;  %v257_v3 = vld [vmem:[%s216_s18 + $0x30] sm:$0xff] (%p33_p3) }
  0x17   : > { %254 = vst [vmem:[%s212_s19 + $0x8] sm:$0xff] %v253_v1 }
  0x18   : > { %256 = vst [vmem:[%s212_s19 + $0x10] sm:$0xff] %v255_v2 }
  0x19   : > { %258 = vst [vmem:[%s212_s19 + $0x18] sm:$0xff] %v257_v3 }
  0x1a PF: > { %264 = sbr.rel (!%p1430_p6) target bundleno = 34 (0x22), region = 62  ;;  %s266_s20 = sand.u32 (%p1430_p6), 1, %s1329_s22  }
  0x1b   : > { %s1194_s28 = sshll.u32 (%p1430_p6), %s47_s30, 6  ;;  %s1144_s29 = sshll.u32 (%p1430_p6), %s266_s20, 5 }
  0x1c   : > { %s1067_s10 = scalar_lea.vmem (%p1430_p6), %s1665_s1, %s1194_s28  ;;  %s268_s13 = scalar_lea.vmem (%p1430_p6), [#allocation7], %s1144_s29 }
  0x1d   : > { %v1147_v4 = vld [vmem:[%s1067_s10 + $0x8] sm:$0xff] (%p1430_p6)  ;;  %v1148_v5 = vld [vmem:[%s1067_s10 + $0x18] sm:$0xff] (%p1430_p6) }
  0x1e   : > { %v1149_v6 = vld [vmem:[%s1067_s10 + $0x28] sm:$0xff] (%p1430_p6)  ;;  %310 = vst [vmem:[%s268_s13] sm:$0xff] (%p1430_p6), %v1147_v4  ;;  %v1150_v7 = vld [vmem:[%s1067_s10 + $0x38] sm:$0xff] (%p1430_p6) }
  0x1f   : > { %312 = vst [vmem:[%s268_s13 + $0x8] sm:$0xff] %v1148_v5 }
  0x20   : > { %314 = vst [vmem:[%s268_s13 + $0x10] sm:$0xff] %v1149_v6 }
  0x21   : > { %316 = vst [vmem:[%s268_s13 + $0x18] sm:$0xff] %v1150_v7 }
  0x22 PF: > { %p1151_p8 = scmp.ge.s32.totalorder %s1341_s25, 1  ;;  %p321_p9 = scmp.lt.s32.totalorder %s1341_s25, 3 }
  0x24   : > { %p322_p10 = pnand %p1151_p8, %p321_p9 }
  0x25   : > { %s328_s30 = sand.u32 (!%p322_p10), 1, %s1333_s23   ;;  %s335_s12 = sand.u32 (!%p322_p10), 1, %s1325_s21  }
  0x26   : > { %325 = sbr.rel (%p322_p10) target bundleno = 2544 (0x9f0), region = 100  ;;  %s1152_s14 = sshll.u32 (!%p322_p10), %s328_s30, 5 }
  0x27   : > { %s1153_s15 = sshll.u32 (!%p322_p10), %s335_s12, 5  ;;  %s1154_s16 = sshll.u32 (!%p322_p10), %s1408_s26, 2 }
  0x28   : > { %s383_s17 = ssub.s32 (!%p322_p10), 1, %s1408_s26  ;;  %p378_p11 = scmp.lt.s32.totalorder (!%p322_p10), %s1154_s16, 7 }
  0x29   : > { %s1156_s18 = sshll.u32 (!%p322_p10), %s383_s17, 2  ;;  %s1462_s23 = scalar_lea.vmem (!%p322_p10), [#allocation6], %s1152_s14 }
  0x2a   : > { %p385_p12 = scmp.lt.s32.totalorder (!%p322_p10), %s1156_s18, 7  ;;  %s1464_s10 = scalar_lea.vmem (!%p322_p10), [#allocation7], %s1153_s15 }
  0x2b   : > { %s1678_s16 = smov (!%p378_p11, %s1154_s16), 7  ;;  %p1158_p13 = scmp.ne.s32.totalorder %s1408_s26, 0 }
  0x2c   : > { %s1680_s18 = smov (!%p385_p12, %s1156_s18), 7  ;;  %s1155_s19 = sshll.u32 %s1678_s16, 3 }
  0x2d   : > { %s1455_s28 = scalar_lea.vmem %s1667_s3, %s1155_s19  ;;  %s1157_s29 = sshll.u32 %s1680_s18, 3 }
  0x2e   : > { %s1460_s21 = scalar_lea.vmem %s1668_s4, %s1157_s29  ;;  %394 = sbr.rel (%p1158_p13) target bundleno = 56 (0x38), region = 112 }
  0x33   : > { %vm395_vm0 = vcmask 261120   ;;  %v1343_v8 = vmov 0.0  }
  0x34   : > { %396 = vst.msk [vmem:[#allocation2] sm:$0xff] %vm395_vm0, %v1343_v8 }
  0x35   : > { %397 = vst.msk [vmem:[#allocation3] sm:$0xff] %vm395_vm0, %v1343_v8 }
  0x36   : > { %398 = vst.msk [vmem:[#allocation4] sm:$0xff] %vm395_vm0, %v1343_v8 }
  0x37   : > { %399 = vst.msk [vmem:[#allocation5] sm:$0xff] %vm395_vm0, %v1343_v8 }
  0x38 PF: > { %v414_v10 = vld [vmem:[%s1666_s2 + $0x70] sm:$0xff]  ;;  %v415_v11 = vld [vmem:[%s1666_s2 + $0x78] sm:$0xff]  ;;  %s1344_s15 = smov 32   ;;  %v412_v12 = vld [vmem:[%s1666_s2 + $0x60] sm:$0xff]  ;;  %vm424_vm1 = vcmask 261120   ;;  %vm426_vm2 = vcmask 523264  }
  0x39   : > { %438 = vmatpush.msra.mxu0 %v414_v10  ;;  %v413_v13 = vld [vmem:[%s1666_s2 + $0x68] sm:$0xff]  ;;  %458 = vmatpush.msra.mxu1 %v415_v11  ;;  %v410_v14 = vld [vmem:[%s1666_s2 + $0x50] sm:$0xff]  ;;  %v411_v15 = vld [vmem:[%s1666_s2 + $0x58] sm:$0xff]  ;;  %s1345_s18 = smov 64   ;;  %s1346_s19 = smov 96  }
  0x3a   : > { %583 = vmatpush.msra.mxu2 %v414_v10  ;;  %603 = vmatpush.msra.mxu3 %v415_v11  ;;  %v408_v16 = vld [vmem:[%s1666_s2 + $0x40] sm:$0xff]  ;;  %v409_v17 = vld [vmem:[%s1666_s2 + $0x48] sm:$0xff]  ;;  %v406_v18 = vld [vmem:[%s1666_s2 + $0x30] sm:$0xff]  ;;  %p1187_p0 = scmp.ne.s32.totalorder %s1408_s26, 1 }
  0x3b   : > { %439 = vmatpush.msra.mxu0 %v412_v12  ;;  %459 = vmatpush.msra.mxu1 %v413_v13  ;;  %v407_v19 = vld [vmem:[%s1666_s2 + $0x38] sm:$0xff]  ;;  %v404_v20 = vld [vmem:[%s1666_s2 + $0x20] sm:$0xff]  ;;  %v405_v21 = vld [vmem:[%s1666_s2 + $0x28] sm:$0xff] }
  0x3c   : > { %584 = vmatpush.msra.mxu2 %v412_v12  ;;  %604 = vmatpush.msra.mxu3 %v413_v13  ;;  %v402_v22 = vld [vmem:[%s1666_s2 + $0x10] sm:$0xff]  ;;  %v403_v23 = vld [vmem:[%s1666_s2 + $0x18] sm:$0xff]  ;;  %v400_v24 = vld [vmem:[%s1666_s2] sm:$0xff] }
  0x3d   : > { %v418_v9 = vld [vmem:[#allocation4] sm:$0xff]  ;;  %440 = vmatpush.msra.mxu0 %v410_v14  ;;  %460 = vmatpush.msra.mxu1 %v411_v15  ;;  %v401_v25 = vld [vmem:[%s1666_s2 + $0x8] sm:$0xff]  ;;  %v416_v27 = vld [vmem:[#allocation2] sm:$0xff] }
  0x3e   : > { %421 = vrot.lane.b32.xlu0 %v418_v9, %s1344_s15  ;;  %585 = vmatpush.msra.mxu2 %v410_v14  ;;  %v419_v26 = vld [vmem:[#allocation5] sm:$0xff]  ;;  %v470_v30 = vld [vmem:[%s1462_s23] sm:$0xff]  ;;  %v417_v38 = vld [vmem:[#allocation3] sm:$0xff] }
  0x3f   : > { %441 = vmatpush.msra.mxu0 %v408_v16  ;;  %605 = vmatpush.msra.mxu3 %v411_v15  ;;  %v1161_v31 = vld [vmem:[%s1464_s10 + $0x18] sm:$0xff] }
  0x40   : > { %461 = vmatpush.msra.mxu1 %v409_v17  ;;  %586 = vmatpush.msra.mxu2 %v408_v16 }
  0x41   : > { %442 = vmatpush.msra.mxu0 %v406_v18  ;;  %606 = vmatpush.msra.mxu3 %v409_v17 }
  0x42   : > { %462 = vmatpush.msra.mxu1 %v407_v19  ;;  %587 = vmatpush.msra.mxu2 %v406_v18 }
  0x43   : > { %443 = vmatpush.msra.mxu0 %v404_v20  ;;  %607 = vmatpush.msra.mxu3 %v407_v19 }
  0x44   : > { %463 = vmatpush.msra.mxu1 %v405_v21  ;;  %588 = vmatpush.msra.mxu2 %v404_v20 }
  0x45   : > { %444 = vmatpush.msra.mxu0 %v402_v22  ;;  %608 = vmatpush.msra.mxu3 %v405_v21 }
  0x46   : > { %464 = vmatpush.msra.mxu1 %v403_v23  ;;  %589 = vmatpush.msra.mxu2 %v402_v22 }
  0x47   : > { %609 = vmatpush.msra.mxu3 %v403_v23  ;;  %445 = vmatpush.msra.mxu0 %v400_v24 }
  0x48   : > { %465 = vmatpush.msra.mxu1 %v401_v25  ;;  %590 = vmatpush.msra.mxu2 %v400_v24 }
  0x49   : > { %610 = vmatpush.msra.mxu3 %v401_v25  ;;  %537 = vrot.lane.b32.xlu2 %v419_v26, %s1344_s15 }
  0x4a   : > { %722 = vmatpush.msrb.mxu0 %v414_v10  ;;  %742 = vmatpush.msrb.mxu1 %v415_v11 }
  0x4b   : > { %861 = vmatpush.msrb.mxu2 %v414_v10  ;;  %881 = vmatpush.msrb.mxu3 %v415_v11 }
  0x4c   : > { %723 = vmatpush.msrb.mxu0 %v412_v12  ;;  %743 = vmatpush.msrb.mxu1 %v413_v13 }
  0x4d   : > { %862 = vmatpush.msrb.mxu2 %v412_v12  ;;  %882 = vmatpush.msrb.mxu3 %v413_v13 }
  0x4e   : > { %724 = vmatpush.msrb.mxu0 %v410_v14  ;;  %744 = vmatpush.msrb.mxu1 %v411_v15 }
  0x4f   : > { %863 = vmatpush.msrb.mxu2 %v410_v14  ;;  %883 = vmatpush.msrb.mxu3 %v411_v15 }
  0x50   : > { %725 = vmatpush.msrb.mxu0 %v408_v16  ;;  %745 = vmatpush.msrb.mxu1 %v409_v17 }
  0x51   : > { %864 = vmatpush.msrb.mxu2 %v408_v16  ;;  %884 = vmatpush.msrb.mxu3 %v409_v17 }
  0x52   : > { %726 = vmatpush.msrb.mxu0 %v406_v18  ;;  %746 = vmatpush.msrb.mxu1 %v407_v19 }
  0x53   : > { %865 = vmatpush.msrb.mxu2 %v406_v18  ;;  %885 = vmatpush.msrb.mxu3 %v407_v19 }
  0x54   : > { %727 = vmatpush.msrb.mxu0 %v404_v20  ;;  %747 = vmatpush.msrb.mxu1 %v405_v21 }
  0x55   : > { %866 = vmatpush.msrb.mxu2 %v404_v20  ;;  %886 = vmatpush.msrb.mxu3 %v405_v21 }
  0x56   : > { %728 = vmatpush.msrb.mxu0 %v402_v22  ;;  %748 = vmatpush.msrb.mxu1 %v403_v23 }
  0x57   : > { %867 = vmatpush.msrb.mxu2 %v402_v22  ;;  %887 = vmatpush.msrb.mxu3 %v403_v23  ;;  %v1167_v22 = vld [vmem:[%s1462_s23 + $0x8] sm:$0xff]  ;;  %v1168_v23 = vld [vmem:[%s1464_s10 + $0x10] sm:$0xff] }
  0x58   : > { %729 = vmatpush.msrb.mxu0 %v400_v24  ;;  %749 = vmatpush.msrb.mxu1 %v401_v25 }
  0x59   : > { %868 = vmatpush.msrb.mxu2 %v400_v24  ;;  %888 = vmatpush.msrb.mxu3 %v401_v25 }
  0xa3   : > { %v538_v5 = vpop.permute.xlu2 %537 }
  0xb0   : > { %v422_v28 = vpop.permute.xlu0 %421 }
  0xb1   : > { %v425_v29 = vsel %vm424_vm1, %v416_v27, %v422_v28 }
  0xb2   : > { %1159 = vmatmul.msk.f32.vlgmr.msra.gmra.mxu0 %vm426_vm2, %v425_v29  ;;  %1160 = vmatmul.msk.f32.vlgmr.msra.gmra.mxu1 %vm426_vm2, %v425_v29 }
 0x12f   : > { %v447_v32 = vpop.f32.mrf.mxu0  ;;  %v467_v33 = vpop.f32.mrf.mxu1 }
 0x130   : > { %v471_v34 = vadd.f32 %v470_v30, %v447_v32  ;;  %v474_v35 = vadd.f32 %v1161_v31, %v467_v33 }
 0x132   : > { %1239 = vtanh.f32 %v471_v34  ;;  %v1162_v39 = vmul.f32 -1.442695, %v471_v34  ;;  %v1163_v40 = vmul.f32 -1.442695, %v474_v35 }
 0x133   : > { %1241 = vtanh.f32 %v474_v35 }
 0x134   : > { %1243 = vpow2.f32 %v1162_v39 }
 0x135   : > { %1245 = vpow2.f32 %v1163_v40 }
 0x138   : > { %v1240_v36 = vpop.eup %1239 }
 0x139   : > { %v1242_v37 = vpop.eup %1241  ;;  %501 = vrot.lane.b32.xlu0 %v1240_v36, %s1344_s15 }
 0x13a   : > { %542 = vrot.lane.b32.xlu1 %v1242_v37, %s1344_s15  ;;  %v1244_v41 = vpop.eup %1243 }
 0x13b   : > { %v1246_v42 = vpop.eup %1245  ;;  %v478_v43 = vadd.f32 1.0, %v1244_v41 }
 0x13c   : > { %v519_v44 = vadd.f32 1.0, %v1246_v42 }
 0x13d   : > { %1247 = vrcp.f32 %v478_v43  ;;  %v490_v55 = vand.u32 2147483648, %v478_v43  ;;  %vm484_vm5 = vweird.f32 %v478_v43  ;;  %v488_v57 = vand.u32 2147483647, %v478_v43 }
 0x13e   : > { %1249 = vrcp.f32 %v519_v44  ;;  %v531_v56 = vand.u32 2147483648, %v519_v44  ;;  %vm525_vm6 = vweird.f32 %v519_v44  ;;  %v529_v58 = vand.u32 2147483647, %v519_v44 }
 0x13f   : > { %v491_v61 = vor.u32 1.1754944e-38, %v490_v55  ;;  %vm489_vm9 = vcmp.eq.f32.partialorder %v488_v57, 8.507059e+37 }
 0x140   : > { %v532_v62 = vor.u32 1.1754944e-38, %v531_v56  ;;  %vm530_vm10 = vcmp.eq.f32.partialorder %v529_v58, 8.507059e+37 }
 0x142   : > { %496 = vrot.lane.b32.xlu1 %v417_v38, %s1344_s15 }
 0x143   : > { %v1248_v45 = vpop.eup %1247 }
 0x144   : > { %v1250_v46 = vpop.eup %1249  ;;  %v480_v47 = vmul.f32 %v1248_v45, %v478_v43  ;;  %vm485_vm3 = vweird.f32 %v1248_v45 }
 0x145   : > { %v521_v48 = vmul.f32 %v1250_v46, %v519_v44  ;;  %vm526_vm4 = vweird.f32 %v1250_v46  ;;  %vm486_vm7 = vmor %vm484_vm5, %vm485_vm3 }
 0x146   : > { %v481_v49 = vsub.f32 1.0, %v480_v47  ;;  %vm527_vm8 = vmor %vm525_vm6, %vm526_vm4 }
 0x147   : > { %v522_v50 = vsub.f32 1.0, %v521_v48 }
 0x148   : > { %v482_v51 = vmul.f32 %v1248_v45, %v481_v49 }
 0x149   : > { %v523_v52 = vmul.f32 %v1250_v46, %v522_v50 }
 0x14a   : > { %v483_v53 = vadd.f32 %v1248_v45, %v482_v51 }
 0x14b   : > { %v524_v54 = vadd.f32 %v1250_v46, %v523_v52 }
 0x14c   : > { %v487_v59 = vsel %vm486_vm7, %v1248_v45, %v483_v53 }
 0x14d   : > { %v528_v60 = vsel %vm527_vm8, %v1250_v46, %v524_v54  ;;  %v492_v0 = vsel %vm489_vm9, %v491_v61, %v487_v59 }
 0x14e   : > { %v533_v1 = vsel %vm530_vm10, %v532_v62, %v528_v60 }
 0x14f   : > { %v540_v11 = vmul.f32 %v538_v5, %v533_v1 }
 0x1ab   : > { %v502_v63 = vpop.permute.xlu0 %501 }
 0x1ac   : > { %v543_v2 = vpop.permute.xlu1 %542  ;;  %v504_v3 = vmul.f32 %v502_v63, %v492_v0 }
 0x1ad   : > { %v545_v4 = vmul.f32 %v543_v2, %v533_v1 }
 0x1ae   : > { %506 = vrot.lane.b32.xlu2 %v504_v3, %s1344_s15 }
 0x1af   : > { %547 = vrot.lane.b32.xlu0 %v545_v4, %s1344_s15 }
 0x1b4   : > { %v497_v6 = vpop.permute.xlu1 %496 }
 0x1b5   : > { %v499_v7 = vmul.f32 %v497_v6, %v492_v0 }
 0x208   : > { %v507_v8 = vpop.permute.xlu2 %506 }
 0x209   : > { %v1527_v9 = vadd.f32 %v507_v8, %v499_v7 }
 0x20b   : > { %1251 = vtanh.f32 %v1527_v9 }
 0x211   : > { %v1252_v10 = vpop.eup %1251 }
 0x212   : > { %512 = vrot.lane.b32.xlu1 %v1252_v10, %s1344_s15 }
 0x221   : > { %v548_v12 = vpop.permute.xlu0 %547 }
 0x222   : > { %v1531_v13 = vadd.f32 %v548_v12, %v540_v11  ;;  %v1175_v11 = vld [vmem:[%s1462_s23 + $0x10] sm:$0xff]  ;;  %v1176_v12 = vld [vmem:[%s1464_s10 + $0x8] sm:$0xff] }
 0x224   : > { %1253 = vtanh.f32 %v1531_v13 }
 0x22a   : > { %v1254_v14 = vpop.eup %1253 }
 0x22b   : > { %553 = vrot.lane.b32.xlu2 %v1254_v14, %s1344_s15 }
 0x284   : > { %v513_v15 = vpop.permute.xlu1 %512 }
 0x285   : > { %v554_v16 = vpop.permute.xlu2 %553  ;;  %v515_v17 = vmul.f32 %v513_v15, %v492_v0 }
 0x286   : > { %v1535_v18 = vmul.f32 %v554_v16, %v533_v1 }
 0x287   : > { %558 = vrot.lane.b32.xlu0 %v515_v17, %s1345_s18 }
 0x288   : > { %568 = vrot.lane.b32.xlu1 %v1535_v18, %s1346_s19 }
 0x2f9   : > { %v559_v19 = vpop.permute.xlu0 %558 }
 0x2fa   : > { %561 = vst.msk [vmem:[%s1455_s28] sm:$0xff] %vm424_vm1, %v559_v19  ;;  %v569_v20 = vpop.permute.xlu1 %568 }
 0x2fb   : > { %v571_v21 = vsel %vm424_vm1, %v559_v19, %v569_v20 }
 0x2fc   : > { %1165 = vmatmul.msk.f32.vlgmr.msra.gmra.mxu2 %vm426_vm2, %v571_v21  ;;  %1166 = vmatmul.msk.f32.vlgmr.msra.gmra.mxu3 %vm426_vm2, %v571_v21 }
 0x37f   : > { %v592_v24 = vpop.f32.mrf.mxu2  ;;  %v612_v25 = vpop.f32.mrf.mxu3 }
 0x380   : > { %v617_v26 = vadd.f32 %v1167_v22, %v592_v24  ;;  %v620_v27 = vadd.f32 %v1168_v23, %v612_v25 }
 0x382   : > { %1255 = vtanh.f32 %v617_v26  ;;  %v1169_v30 = vmul.f32 -1.442695, %v617_v26  ;;  %v1170_v34 = vmul.f32 -1.442695, %v620_v27 }
 0x383   : > { %1257 = vtanh.f32 %v620_v27 }
 0x384   : > { %1259 = vpow2.f32 %v1169_v30 }
 0x388   : > { %v1256_v28 = vpop.eup %1255 }
 0x389   : > { %v1258_v29 = vpop.eup %1257  ;;  %643 = vrot.lane.b32.xlu2 %v1256_v28, %s1344_s15 }
 0x38a   : > { %680 = vrot.lane.b32.xlu0 %v1258_v29, %s1344_s15  ;;  %v1260_v31 = vpop.eup %1259 }
 0x38b   : > { %v624_v32 = vadd.f32 1.0, %v1260_v31 }
 0x38d   : > { %1261 = vrcp.f32 %v624_v32  ;;  %v636_v41 = vand.u32 2147483648, %v624_v32  ;;  %vm630_vm12 = vweird.f32 %v624_v32  ;;  %v634_v42 = vand.u32 2147483647, %v624_v32 }
 0x38e   : > { %1263 = vpow2.f32 %v1170_v34 }
 0x38f   : > { %v637_v44 = vor.u32 1.1754944e-38, %v636_v41  ;;  %vm635_vm14 = vcmp.eq.f32.partialorder %v634_v42, 8.507059e+37 }
 0x393   : > { %v1262_v33 = vpop.eup %1261 }
 0x394   : > { %v626_v35 = vmul.f32 %v1262_v33, %v624_v32  ;;  %v1264_v38 = vpop.eup %1263  ;;  %vm631_vm11 = vweird.f32 %v1262_v33 }
 0x395   : > { %v661_v39 = vadd.f32 1.0, %v1264_v38  ;;  %vm632_vm13 = vmor %vm630_vm12, %vm631_vm11 }
 0x396   : > { %v627_v36 = vsub.f32 1.0, %v626_v35 }
 0x397   : > { %1265 = vrcp.f32 %v661_v39  ;;  %v673_v53 = vand.u32 2147483648, %v661_v39  ;;  %vm667_vm0 = vweird.f32 %v661_v39  ;;  %v671_v54 = vand.u32 2147483647, %v661_v39 }
 0x398   : > { %v628_v37 = vmul.f32 %v1262_v33, %v627_v36 }
 0x399   : > { %v674_v56 = vor.u32 1.1754944e-38, %v673_v53  ;;  %vm672_vm4 = vcmp.eq.f32.partialorder %v671_v54, 8.507059e+37 }
 0x39a   : > { %v629_v40 = vadd.f32 %v1262_v33, %v628_v37 }
 0x39c   : > { %v633_v43 = vsel %vm632_vm13, %v1262_v33, %v629_v40 }
 0x39d   : > { %v638_v46 = vsel %vm635_vm14, %v637_v44, %v633_v43  ;;  %v1266_v48 = vpop.eup %1265 }
 0x39e   : > { %v663_v49 = vmul.f32 %v1266_v48, %v661_v39  ;;  %vm668_vm15 = vweird.f32 %v1266_v48  ;;  %v641_v60 = vmul.f32 %v638_v46, %v1527_v9 }
 0x39f   : > { %vm669_vm3 = vmor %vm667_vm0, %vm668_vm15 }
 0x3a0   : > { %v664_v50 = vsub.f32 1.0, %v663_v49 }
 0x3a2   : > { %v665_v51 = vmul.f32 %v1266_v48, %v664_v50 }
 0x3a4   : > { %v666_v52 = vadd.f32 %v1266_v48, %v665_v51 }
 0x3a6   : > { %v670_v55 = vsel %vm669_vm3, %v1266_v48, %v666_v52 }
 0x3a7   : > { %v675_v58 = vsel %vm672_vm4, %v674_v56, %v670_v55 }
 0x3a8   : > { %v678_v61 = vmul.f32 %v675_v58, %v1531_v13 }
 0x3e3   : > { %v644_v45 = vpop.permute.xlu2 %643 }
 0x3e4   : > { %v646_v47 = vmul.f32 %v644_v45, %v638_v46 }
 0x3e6   : > { %648 = vrot.lane.b32.xlu1 %v646_v47, %s1344_s15 }
 0x3fc   : > { %v681_v57 = vpop.permute.xlu0 %680 }
 0x3fd   : > { %v683_v59 = vmul.f32 %v681_v57, %v675_v58 }
 0x3ff   : > { %685 = vrot.lane.b32.xlu2 %v683_v59, %s1344_s15 }
 0x458   : > { %v649_v62 = vpop.permute.xlu1 %648 }
 0x459   : > { %v686_v63 = vpop.permute.xlu2 %685  ;;  %v1553_v0 = vadd.f32 %v649_v62, %v641_v60 }
 0x45a   : > { %v1555_v1 = vadd.f32 %v686_v63, %v678_v61 }
 0x45b   : > { %1267 = vtanh.f32 %v1553_v0 }
 0x45c   : > { %1269 = vtanh.f32 %v1555_v1 }
 0x461   : > { %v1268_v2 = vpop.eup %1267 }
 0x462   : > { %v1270_v3 = vpop.eup %1269  ;;  %654 = vrot.lane.b32.xlu0 %v1268_v2, %s1344_s15  ;;  %v896_v2 = vld [vmem:[%s1464_s10] sm:$0xff] }
 0x463   : > { %691 = vrot.lane.b32.xlu1 %v1270_v3, %s1344_s15 }
 0x4d4   : > { %v655_v4 = vpop.permute.xlu0 %654 }
 0x4d5   : > { %v692_v5 = vpop.permute.xlu1 %691  ;;  %v657_v6 = vmul.f32 %v655_v4, %v638_v46 }
 0x4d6   : > { %v1561_v7 = vmul.f32 %v692_v5, %v675_v58 }
 0x4d7   : > { %696 = vrot.lane.b32.xlu2 %v657_v6, %s1345_s18 }
 0x4d8   : > { %707 = vrot.lane.b32.xlu0 %v1561_v7, %s1346_s19 }
 0x531   : > { %v697_v8 = vpop.permute.xlu2 %696 }
 0x532   : > { %1171 = vst.msk [vmem:[%s1455_s28 + $0x8] sm:$0xff] %vm424_vm1, %v697_v8 }
 0x54a   : > { %v708_v9 = vpop.permute.xlu0 %707 }
 0x54b   : > { %v710_v10 = vsel %vm424_vm1, %v697_v8, %v708_v9 }
 0x54c   : > { %1173 = vmatmul.msk.f32.vlgmr.msrb.gmra.mxu0 %vm426_vm2, %v710_v10  ;;  %1174 = vmatmul.msk.f32.vlgmr.msrb.gmra.mxu1 %vm426_vm2, %v710_v10 }
 0x5c9   : > { %v731_v13 = vpop.f32.mrf.mxu0  ;;  %v751_v14 = vpop.f32.mrf.mxu1 }
 0x5ca   : > { %v756_v15 = vadd.f32 %v1175_v11, %v731_v13  ;;  %v759_v16 = vadd.f32 %v1176_v12, %v751_v14 }
 0x5cc   : > { %1271 = vtanh.f32 %v756_v15  ;;  %v1178_v20 = vmul.f32 -1.442695, %v759_v16  ;;  %v1177_v24 = vmul.f32 -1.442695, %v756_v15 }
 0x5cd   : > { %1273 = vtanh.f32 %v759_v16 }
 0x5ce   : > { %1275 = vpow2.f32 %v1178_v20 }
 0x5d2   : > { %v1272_v17 = vpop.eup %1271 }
 0x5d3   : > { %v1274_v19 = vpop.eup %1273  ;;  %782 = vrot.lane.b32.xlu1 %v1272_v17, %s1344_s15 }
 0x5d4   : > { %819 = vrot.lane.b32.xlu2 %v1274_v19, %s1344_s15  ;;  %v1276_v21 = vpop.eup %1275 }
 0x5d5   : > { %v800_v22 = vadd.f32 1.0, %v1276_v21 }
 0x5d7   : > { %1277 = vrcp.f32 %v800_v22  ;;  %v812_v31 = vand.u32 2147483648, %v800_v22  ;;  %vm806_vm6 = vweird.f32 %v800_v22  ;;  %v810_v32 = vand.u32 2147483647, %v800_v22 }
 0x5d8   : > { %1279 = vpow2.f32 %v1177_v24 }
 0x5d9   : > { %v813_v34 = vor.u32 1.1754944e-38, %v812_v31  ;;  %vm811_vm8 = vcmp.eq.f32.partialorder %v810_v32, 8.507059e+37 }
 0x5dd   : > { %v1278_v23 = vpop.eup %1277 }
 0x5de   : > { %v802_v25 = vmul.f32 %v1278_v23, %v800_v22  ;;  %v1280_v27 = vpop.eup %1279  ;;  %vm807_vm5 = vweird.f32 %v1278_v23 }
 0x5df   : > { %v763_v29 = vadd.f32 1.0, %v1280_v27  ;;  %vm808_vm7 = vmor %vm806_vm6, %vm807_vm5 }
 0x5e0   : > { %v803_v26 = vsub.f32 1.0, %v802_v25 }
 0x5e1   : > { %1281 = vrcp.f32 %v763_v29  ;;  %v775_v43 = vand.u32 2147483648, %v763_v29  ;;  %vm769_vm10 = vweird.f32 %v763_v29  ;;  %v773_v44 = vand.u32 2147483647, %v763_v29 }
 0x5e2   : > { %v804_v28 = vmul.f32 %v1278_v23, %v803_v26 }
 0x5e3   : > { %v776_v46 = vor.u32 1.1754944e-38, %v775_v43  ;;  %vm774_vm12 = vcmp.eq.f32.partialorder %v773_v44, 8.507059e+37 }
 0x5e4   : > { %v805_v30 = vadd.f32 %v1278_v23, %v804_v28 }
 0x5e6   : > { %v809_v33 = vsel %vm808_vm7, %v1278_v23, %v805_v30 }
 0x5e7   : > { %v814_v36 = vsel %vm811_vm8, %v813_v34, %v809_v33  ;;  %v1282_v37 = vpop.eup %1281 }
 0x5e8   : > { %v765_v39 = vmul.f32 %v1282_v37, %v763_v29  ;;  %vm770_vm9 = vweird.f32 %v1282_v37  ;;  %v817_v50 = vmul.f32 %v814_v36, %v1555_v1  ;;  %v1183_v1 = vld [vmem:[%s1462_s23 + $0x18] sm:$0xff] }
 0x5e9   : > { %vm771_vm11 = vmor %vm769_vm10, %vm770_vm9 }
 0x5ea   : > { %v766_v40 = vsub.f32 1.0, %v765_v39 }
 0x5ec   : > { %v767_v41 = vmul.f32 %v1282_v37, %v766_v40 }
 0x5ee   : > { %v768_v42 = vadd.f32 %v1282_v37, %v767_v41 }
 0x5f0   : > { %v772_v45 = vsel %vm771_vm11, %v1282_v37, %v768_v42 }
 0x5f1   : > { %v777_v48 = vsel %vm774_vm12, %v776_v46, %v772_v45 }
 0x5f2   : > { %v780_v54 = vmul.f32 %v777_v48, %v1553_v0 }
 0x62e   : > { %v820_v35 = vpop.permute.xlu2 %819 }
 0x62f   : > { %v822_v38 = vmul.f32 %v820_v35, %v814_v36 }
 0x631   : > { %824 = vrot.lane.b32.xlu1 %v822_v38, %s1344_s15 }
 0x645   : > { %v783_v47 = vpop.permute.xlu1 %782 }
 0x646   : > { %v785_v49 = vmul.f32 %v783_v47, %v777_v48 }
 0x648   : > { %787 = vrot.lane.b32.xlu0 %v785_v49, %s1344_s15 }
 0x6a3   : > { %v825_v51 = vpop.permute.xlu1 %824 }
 0x6a4   : > { %v1578_v52 = vadd.f32 %v825_v51, %v817_v50 }
 0x6a6   : > { %1283 = vtanh.f32 %v1578_v52 }
 0x6ac   : > { %v1284_v53 = vpop.eup %1283 }
 0x6ad   : > { %830 = vrot.lane.b32.xlu0 %v1284_v53, %s1344_s15 }
 0x6ba   : > { %v788_v55 = vpop.permute.xlu0 %787 }
 0x6bb   : > { %v1583_v56 = vadd.f32 %v788_v55, %v780_v54 }
 0x6bd   : > { %1285 = vtanh.f32 %v1583_v56 }
 0x6c3   : > { %v1286_v57 = vpop.eup %1285 }
 0x6c4   : > { %793 = vrot.lane.b32.xlu2 %v1286_v57, %s1344_s15 }
 0x71e   : > { %v794_v58 = vpop.permute.xlu2 %793 }
 0x71f   : > { %v831_v59 = vpop.permute.xlu0 %830  ;;  %v796_v60 = vmul.f32 %v794_v58, %v777_v48 }
 0x720   : > { %v1587_v61 = vmul.f32 %v831_v59, %v814_v36 }
 0x721   : > { %835 = vrot.lane.b32.xlu1 %v796_v60, %s1345_s18 }
 0x722   : > { %846 = vrot.lane.b32.xlu2 %v1587_v61, %s1346_s19 }
 0x77c   : > { %v847_v62 = vpop.permute.xlu2 %846 }
 0x793   : > { %v836_v63 = vpop.permute.xlu1 %835 }
 0x794   : > { %1179 = vst.msk [vmem:[%s1455_s28 + $0x10] sm:$0xff] %vm424_vm1, %v836_v63  ;;  %v849_v0 = vsel %vm424_vm1, %v836_v63, %v847_v62 }
 0x795   : > { %1181 = vmatmul.msk.f32.vlgmr.msrb.gmra.mxu2 %vm426_vm2, %v849_v0  ;;  %1182 = vmatmul.msk.f32.vlgmr.msrb.gmra.mxu3 %vm426_vm2, %v849_v0 }
 0x818   : > { %v870_v3 = vpop.f32.mrf.mxu2  ;;  %v890_v4 = vpop.f32.mrf.mxu3 }
 0x819   : > { %v895_v5 = vadd.f32 %v1183_v1, %v870_v3  ;;  %v897_v6 = vadd.f32 %v896_v2, %v890_v4 }
 0x81b   : > { %1287 = vtanh.f32 %v895_v5  ;;  %v1184_v10 = vmul.f32 -1.442695, %v895_v5  ;;  %v1185_v11 = vmul.f32 -1.442695, %v897_v6 }
 0x81c   : > { %1289 = vtanh.f32 %v897_v6 }
 0x81d   : > { %1291 = vpow2.f32 %v1184_v10 }
 0x81e   : > { %1293 = vpow2.f32 %v1185_v11 }
 0x821   : > { %v1288_v8 = vpop.eup %1287 }
 0x822   : > { %v1290_v9 = vpop.eup %1289  ;;  %920 = vrot.lane.b32.xlu0 %v1288_v8, %s1344_s15 }
 0x823   : > { %957 = vrot.lane.b32.xlu1 %v1290_v9, %s1344_s15  ;;  %v1292_v12 = vpop.eup %1291 }
 0x824   : > { %v1294_v13 = vpop.eup %1293  ;;  %v901_v14 = vadd.f32 1.0, %v1292_v12 }
 0x825   : > { %v938_v15 = vadd.f32 1.0, %v1294_v13 }
 0x826   : > { %1295 = vrcp.f32 %v901_v14  ;;  %v913_v27 = vand.u32 2147483648, %v901_v14  ;;  %vm907_vm14 = vweird.f32 %v901_v14  ;;  %v911_v29 = vand.u32 2147483647, %v901_v14 }
 0x827   : > { %1297 = vrcp.f32 %v938_v15  ;;  %v950_v28 = vand.u32 2147483648, %v938_v15  ;;  %vm944_vm15 = vweird.f32 %v938_v15  ;;  %v948_v30 = vand.u32 2147483647, %v938_v15 }
 0x828   : > { %v914_v33 = vor.u32 1.1754944e-38, %v913_v27  ;;  %vm912_vm4 = vcmp.eq.f32.partialorder %v911_v29, 8.507059e+37 }
 0x829   : > { %v951_v34 = vor.u32 1.1754944e-38, %v950_v28  ;;  %vm949_vm5 = vcmp.eq.f32.partialorder %v948_v30, 8.507059e+37 }
 0x82c   : > { %v1296_v16 = vpop.eup %1295 }
 0x82d   : > { %v1298_v17 = vpop.eup %1297  ;;  %v903_v19 = vmul.f32 %v1296_v16, %v901_v14  ;;  %vm908_vm2 = vweird.f32 %v1296_v16 }
 0x82e   : > { %v940_v20 = vmul.f32 %v1298_v17, %v938_v15  ;;  %vm945_vm13 = vweird.f32 %v1298_v17  ;;  %vm909_vm0 = vmor %vm907_vm14, %vm908_vm2 }
 0x82f   : > { %v904_v21 = vsub.f32 1.0, %v903_v19  ;;  %vm946_vm3 = vmor %vm944_vm15, %vm945_vm13 }
 0x830   : > { %v941_v22 = vsub.f32 1.0, %v940_v20 }
 0x831   : > { %v905_v23 = vmul.f32 %v1296_v16, %v904_v21 }
 0x832   : > { %v942_v24 = vmul.f32 %v1298_v17, %v941_v22 }
 0x833   : > { %v906_v25 = vadd.f32 %v1296_v16, %v905_v23 }
 0x834   : > { %v943_v26 = vadd.f32 %v1298_v17, %v942_v24 }
 0x835   : > { %v910_v31 = vsel %vm909_vm0, %v1296_v16, %v906_v25 }
 0x836   : > { %v947_v32 = vsel %vm946_vm3, %v1298_v17, %v943_v26  ;;  %v915_v36 = vsel %vm912_vm4, %v914_v33, %v910_v31 }
 0x837   : > { %v952_v38 = vsel %vm949_vm5, %v951_v34, %v947_v32  ;;  %v918_v41 = vmul.f32 %v915_v36, %v1583_v56 }
 0x838   : > { %v955_v45 = vmul.f32 %v952_v38, %v1578_v52 }
 0x894   : > { %v921_v35 = vpop.permute.xlu0 %920 }
 0x895   : > { %v958_v37 = vpop.permute.xlu1 %957  ;;  %v923_v39 = vmul.f32 %v921_v35, %v915_v36 }
 0x896   : > { %v960_v40 = vmul.f32 %v958_v37, %v952_v38 }
 0x897   : > { %925 = vrot.lane.b32.xlu2 %v923_v39, %s1344_s15 }
 0x898   : > { %962 = vrot.lane.b32.xlu0 %v960_v40, %s1344_s15 }
 0x8a0   : > { %563 = vrot.lane.b32.xlu0 %v1535_v18, %s1345_s18 }
 0x8f1   : > { %v926_v42 = vpop.permute.xlu2 %925 }
 0x8f2   : > { %v928_v43 = vadd.f32 %v926_v42, %v918_v41 }
 0x8f4   : > { %1299 = vtanh.f32 %v928_v43 }
 0x8fa   : > { %v1300_v44 = vpop.eup %1299 }
 0x8fb   : > { %931 = vrot.lane.b32.xlu1 %v1300_v44, %s1344_s15 }
 0x903   : > { %702 = vrot.lane.b32.xlu1 %v1561_v7, %s1345_s18 }
 0x90a   : > { %v963_v46 = vpop.permute.xlu0 %962 }
 0x90b   : > { %v965_v47 = vadd.f32 %v963_v46, %v955_v45 }
 0x90d   : > { %1301 = vtanh.f32 %v965_v47 }
 0x912   : > { %v564_v48 = vpop.permute.xlu0 %563 }
 0x913   : > { %v1302_v18 = vpop.eup %1301  ;;  %1164 = vst.msk [vmem:[%s1460_s21 + $0x18] sm:$0xff] %vm424_vm1, %v564_v48 }
 0x914   : > { %968 = vrot.lane.b32.xlu2 %v1302_v18, %s1344_s15 }
 0x91c   : > { %841 = vrot.lane.b32.xlu2 %v1587_v61, %s1345_s18 }
 0x924   : > { %985 = vrot.lane.b32.xlu2 %v928_v43, %s1346_s19 }
 0x96d   : > { %v932_v7 = vpop.permute.xlu1 %931 }
 0x96e   : > { %v969_v49 = vpop.permute.xlu2 %968  ;;  %v934_v50 = vmul.f32 %v932_v7, %v915_v36 }
 0x96f   : > { %v971_v51 = vmul.f32 %v969_v49, %v952_v38 }
 0x970   : > { %973 = vrot.lane.b32.xlu0 %v934_v50, %s1345_s18 }
 0x971   : > { %979 = vrot.lane.b32.xlu1 %v971_v51, %s1345_s18 }
 0x975   : > { %v703_v52 = vpop.permute.xlu1 %702 }
 0x976   : > { %v842_v53 = vpop.permute.xlu2 %841  ;;  %1172 = vst.msk [vmem:[%s1460_s21 + $0x10] sm:$0xff] %vm424_vm1, %v703_v52 }
 0x977   : > { %1180 = vst.msk [vmem:[%s1460_s21 + $0x8] sm:$0xff] %vm424_vm1, %v842_v53 }
 0x978   : > { %991 = vrot.lane.b32.xlu0 %v965_v47, %s1346_s19 }
 0x97e   : > { %v986_v54 = vpop.permute.xlu2 %985 }
 0x97f   : > { %988 = vst.msk [vmem:[#allocation3] sm:$0xff] %vm424_vm1, %v986_v54 }
 0x9e2   : > { %v974_v55 = vpop.permute.xlu0 %973 }
 0x9e3   : > { %1186 = vst.msk [vmem:[%s1455_s28 + $0x18] sm:$0xff] %vm424_vm1, %v974_v55  ;;  %v980_v56 = vpop.permute.xlu1 %979 }
 0x9e4   : > { %983 = vst.msk [vmem:[#allocation2] sm:$0xff] %vm424_vm1, %v974_v55 }
 0x9e5   : > { %982 = vst.msk [vmem:[%s1460_s21] sm:$0xff] %vm424_vm1, %v980_v56 }
 0x9e6   : > { %989 = vst.msk [vmem:[#allocation4] sm:$0xff] %vm424_vm1, %v980_v56 }
 0x9e7   : > { %998 = sbr.rel (%p1187_p0) target bundleno = 2544 (0x9f0), region = 116 }
 0x9ea   : > { %v992_v57 = vpop.permute.xlu0 %991 }
 0x9eb   : > { %994 = vst.msk [vmem:[#allocation5] sm:$0xff] %vm424_vm1, %v992_v57 }
 0x9ec   : > { %999 = vst.msk [vmem:[%s1669_s5] sm:$0xff] %vm424_vm1, %v974_v55 }
 0x9ed   : > { %1188 = vst.msk [vmem:[%s1669_s5 + $0x8] sm:$0xff] %vm424_vm1, %v980_v56 }
 0x9ee   : > { %1002 = vst.msk [vmem:[%s1670_s6] sm:$0xff] %vm424_vm1, %v986_v54 }
 0x9ef   : > { %1189 = vst.msk [vmem:[%s1670_s6 + $0x8] sm:$0xff] %vm424_vm1, %v992_v57 }
 0x9f0 PF: > { %p14_p1 = scmp.ge.s32.totalorder %s1411_s27, 4   ;;  %s1672_s21 = smov %s1329_s22 }
 0x9f1   : > { %s1673_s22 = smov %s1428_s11  ;;  %s1674_s23 = smov %s1337_s24 }
 0x9f2   : > { %s1675_s24 = smov %s1421_s7  ;;  %s1676_s25 = smov %s1411_s27 }
 0x9f3   :  { %16 = sbr.rel (!%p14_p1) target bundleno = 3 (0x3), region = 201 }

</bundles_post_ra>
